<compile_context>
chip_gen: v7x
topology: tpu7x:2x2x1
jax: 0.10.0
libtpu: 0.0.40
codegen_flags: <defaults>
</compile_context>

<pallas_src>
import functools

import jax
import jax.numpy as jnp
from jax.experimental import pallas as pl
from jax.experimental.pallas import tpu as pltpu

_VMEM_LIMIT = 32 * 1024 * 1024  # safe on v5e / v6e / v7x


def _round_up(x, m):
    return ((x + m - 1) // m) * m


def _pad_axis(a, axis, target):
    if a.shape[axis] == target:
        return a
    pads = [(0, 0)] * a.ndim
    pads[axis] = (0, target - a.shape[axis])
    return jnp.pad(a, pads)


# --------------------------------------------------------------------------
# Tiled matmul + bias (+ optional ReLU)
# --------------------------------------------------------------------------

def _linear_kernel(x_ref, w_ref, b_ref, o_ref, acc_ref, *, activation):
    @pl.when(pl.program_id(2) == 0)
    def _():
        acc_ref[...] = jnp.zeros_like(acc_ref)

    acc_ref[...] += jnp.dot(x_ref[...], w_ref[...],
                            preferred_element_type=jnp.float32)

    @pl.when(pl.program_id(2) == pl.num_programs(2) - 1)
    def _():
        y = acc_ref[...] + b_ref[...]
        if activation == "relu":
            y = jnp.maximum(y, 0.0)
        o_ref[...] = y.astype(o_ref.dtype)


def linear(x2d, w, b, activation="none", out_dtype=jnp.bfloat16):
    """(M, K) @ (K, N) + (N,) -> (M, N). Tiled, pipelined, bf16 MXU / f32 acc."""
    M, K = x2d.shape
    N = w.shape[1]

    tm = min(256, _round_up(M, 16))
    tn = min(256, _round_up(N, 128))
    tk = min(512, _round_up(K, 128))
    Mp, Np, Kp = _round_up(M, tm), _round_up(N, tn), _round_up(K, tk)

    xp = _pad_axis(_pad_axis(x2d.astype(jnp.bfloat16), 0, Mp), 1, Kp)
    wp = _pad_axis(_pad_axis(w.astype(jnp.bfloat16), 0, Kp), 1, Np)
    bp = _pad_axis(b.reshape(1, N).astype(jnp.float32), 1, Np)

    grid = (Mp // tm, Np // tn, Kp // tk)
    out = pl.pallas_call(
        functools.partial(_linear_kernel, activation=activation),
        out_shape=jax.ShapeDtypeStruct((Mp, Np), out_dtype),
        grid=grid,
        in_specs=[
            pl.BlockSpec((tm, tk), lambda i, j, k: (i, k)),
            pl.BlockSpec((tk, tn), lambda i, j, k: (k, j)),
            pl.BlockSpec((1, tn), lambda i, j, k: (0, j)),
        ],
        out_specs=pl.BlockSpec((tm, tn), lambda i, j, k: (i, j)),
        scratch_shapes=[pltpu.VMEM((tm, tn), jnp.float32)],
        compiler_params=pltpu.CompilerParams(
            dimension_semantics=("parallel", "parallel", "arbitrary"),
            vmem_limit_bytes=_VMEM_LIMIT),
    )(xp, wp, bp)
    return out[:M, :N]


# --------------------------------------------------------------------------
# Fused residual-add + LayerNorm
# --------------------------------------------------------------------------

def _add_layernorm_kernel(x_ref, r_ref, g_ref, b_ref, o_ref, *, eps):
    x = x_ref[...].astype(jnp.float32) + r_ref[...].astype(jnp.float32)
    mean = jnp.mean(x, axis=-1, keepdims=True)
    var = jnp.mean(jnp.square(x - mean), axis=-1, keepdims=True)
    xn = (x - mean) * jax.lax.rsqrt(var + eps)
    o_ref[...] = (xn * g_ref[...] + b_ref[...]).astype(o_ref.dtype)


def add_layer_norm(x, residual, gamma, beta, eps=1e-5, out_dtype=jnp.bfloat16):
    """LayerNorm(x + residual) over last dim. x, residual: (B, T, E)."""
    B, T, E = x.shape
    M = B * T
    tm = min(256, _round_up(M, 16))
    Mp = _round_up(M, tm)

    x2 = _pad_axis(x.reshape(M, E).astype(jnp.bfloat16), 0, Mp)
    r2 = _pad_axis(residual.reshape(M, E).astype(jnp.bfloat16), 0, Mp)
    g2 = gamma.reshape(1, E).astype(jnp.float32)
    b2 = beta.reshape(1, E).astype(jnp.float32)

    out = pl.pallas_call(
        functools.partial(_add_layernorm_kernel, eps=eps),
        out_shape=jax.ShapeDtypeStruct((Mp, E), out_dtype),
        grid=(Mp // tm,),
        in_specs=[
            pl.BlockSpec((tm, E), lambda i: (i, 0)),
            pl.BlockSpec((tm, E), lambda i: (i, 0)),
            pl.BlockSpec((1, E), lambda i: (0, 0)),
            pl.BlockSpec((1, E), lambda i: (0, 0)),
        ],
        out_specs=pl.BlockSpec((tm, E), lambda i: (i, 0)),
        compiler_params=pltpu.CompilerParams(
            dimension_semantics=("parallel",),
            vmem_limit_bytes=_VMEM_LIMIT),
    )(x2, r2, g2, b2)
    return out[:M].reshape(B, T, E)


# --------------------------------------------------------------------------
# Multi-head scaled dot-product attention (scale pre-folded into Q weights)
# --------------------------------------------------------------------------

def _attention_kernel(q_ref, k_ref, v_ref, m_ref, o_ref, *, num_heads):
    q = q_ref[0]            # (Tq, E) bf16, already scaled by 1/sqrt(d)
    k = k_ref[0]            # (Tk, E) bf16
    v = v_ref[0]            # (Tk, E) bf16
    mask = m_ref[0, 0]      # (mq, Tk) f32, broadcasts over query rows if mq==1
    E = q.shape[-1]
    d = E // num_heads

    outs = []
    for h in range(num_heads):
        qh = q[:, h * d:(h + 1) * d]
        kh = k[:, h * d:(h + 1) * d]
        vh = v[:, h * d:(h + 1) * d]
        # (Tq, d) x (Tk, d) contracted on d -> (Tq, Tk), f32 scores.
        s = jax.lax.dot_general(qh, kh, (((1,), (1,)), ((), ())),
                                preferred_element_type=jnp.float32)
        s = jnp.where(mask != 0, s, jnp.float32(-1e30))
        s_max = jnp.max(s, axis=-1, keepdims=True)
        p = jnp.exp(s - s_max)                       # EUP
        denom = jnp.sum(p, axis=-1, keepdims=True)
        p = p * pl.reciprocal(denom, approx=True)    # EUP approx reciprocal
        outs.append(jnp.dot(p.astype(vh.dtype), vh,
                            preferred_element_type=jnp.float32))
    o_ref[0] = jnp.concatenate(outs, axis=-1).astype(o_ref.dtype)


def attention(q, k, v, mask, num_heads):
    """q: (B,Tq,E)  k,v: (B,Tk,E)  mask: (B,1,{1|Tq},Tk) -> (B,Tq,E)."""
    B, Tq, E = q.shape
    Tk = k.shape[1]
    Tqp = _round_up(Tq, 16)
    Tkp = _round_up(Tk, 16)

    qp = _pad_axis(q.astype(jnp.bfloat16), 1, Tqp)
    kp = _pad_axis(k.astype(jnp.bfloat16), 1, Tkp)
    vp = _pad_axis(v.astype(jnp.bfloat16), 1, Tkp)

    m = mask.astype(jnp.float32)
    m = _pad_axis(m, 3, Tkp)                  # padded keys are masked out
    if m.shape[2] != 1:
        m = _pad_axis(m, 2, Tqp)              # padded query rows (sliced off)
    mq = m.shape[2]

    out = pl.pallas_call(
        functools.partial(_attention_kernel, num_heads=num_heads),
        out_shape=jax.ShapeDtypeStruct((B, Tqp, E), jnp.bfloat16),
        grid=(B,),
        in_specs=[
            pl.BlockSpec((1, Tqp, E), lambda b: (b, 0, 0)),
            pl.BlockSpec((1, Tkp, E), lambda b: (b, 0, 0)),
            pl.BlockSpec((1, Tkp, E), lambda b: (b, 0, 0)),
            pl.BlockSpec((1, 1, mq, Tkp), lambda b: (b, 0, 0, 0)),
        ],
        out_specs=pl.BlockSpec((1, Tqp, E), lambda b: (b, 0, 0)),
        compiler_params=pltpu.CompilerParams(
            dimension_semantics=("parallel",),
            vmem_limit_bytes=_VMEM_LIMIT),
    )(qp, kp, vp, m)
    return out[:, :Tq, :]


# --------------------------------------------------------------------------
# Model glue
# --------------------------------------------------------------------------

def multi_head_attention(p, query, key, value, mask, num_heads):
    """query:(B,Tq,E)  key/value:(B,Tk,E)  mask:(B,1,*,Tk) -> (B,Tq,E)."""
    B, Tq, E = query.shape
    Tk = key.shape[1]
    w_qkv, b_qkv = p["w_qkv"], p["b_qkv"]     # q-part pre-scaled by 1/sqrt(d)

    if (query is key) and (key is value):
        # Self-attention: single fused QKV matmul (x DMA'd once).
        qkv = linear(query.reshape(B * Tq, E), w_qkv, b_qkv).reshape(B, Tq, 3 * E)
        q = qkv[..., :E]
        k = qkv[..., E:2 * E]
        v = qkv[..., 2 * E:]
    else:
        q = linear(query.reshape(B * Tq, E),
                   w_qkv[:, :E], b_qkv[:E]).reshape(B, Tq, E)
        if key is value:
            kv = linear(key.reshape(B * Tk, E),
                        w_qkv[:, E:], b_qkv[E:]).reshape(B, Tk, 2 * E)
            k = kv[..., :E]
            v = kv[..., E:]
        else:
            k = linear(key.reshape(B * Tk, E),
                       w_qkv[:, E:2 * E], b_qkv[E:2 * E]).reshape(B, Tk, E)
            v = linear(value.reshape(B * Tk, E),
                       w_qkv[:, 2 * E:], b_qkv[2 * E:]).reshape(B, Tk, E)

    attn = attention(q, k, v, mask, num_heads)              # (B, Tq, E)
    out = linear(attn.reshape(B * Tq, E), p["wo"], p["bo"]).reshape(B, Tq, E)
    return out


def mha_block(p, query, key, value, mask, num_heads):
    """MultiHeadAttentionBlock: attention + add&norm + FFN(ReLU) + add&norm."""
    B, Tq, E = query.shape
    attn = multi_head_attention(p["attn"], query, key, value, mask, num_heads)
    x = add_layer_norm(attn, query, p["ln1_g"], p["ln1_b"])
    # dropout -> identity (eval)
    h = linear(x.reshape(B * Tq, E), p["w_ff1"], p["b_ff1"], activation="relu")
    h = linear(h, p["w_ff2"], p["b_ff2"]).reshape(B, Tq, E)
    out = add_layer_norm(h, x, p["ln2_g"], p["ln2_b"])
    return out


def decoder_block(p, tgt_emb, src_ctx, src_mask, tgt_mask, num_heads):
    self_attn = multi_head_attention(p["self_attn"], tgt_emb, tgt_emb, tgt_emb,
                                     tgt_mask, num_heads)
    x = add_layer_norm(self_attn, tgt_emb, p["ln_g"], p["ln_b"])
    # dropout -> identity (eval)
    out = mha_block(p["cross_block"], x, src_ctx, src_ctx, src_mask, num_heads)
    return out


def decoder_forward(params, target_tokens, src_ctx, src_mask, tgt_mask, num_heads):
    B, T = target_tokens.shape
    E = params["word_emb"].shape[1]
    positions = jnp.arange(T)[None, :]
    x = (jnp.take(params["word_emb"], target_tokens, axis=0)
         + jnp.take(params["pos_emb"], positions, axis=0))
    x = x.astype(jnp.bfloat16)
    # dropout -> identity (eval)
    for layer_p in params["layers"]:
        x = decoder_block(layer_p, x, src_ctx, src_mask, tgt_mask, num_heads)
    vocab = params["w_out"].shape[1]
    logits = linear(x.reshape(B * T, E), params["w_out"], params["b_out"],
                    out_dtype=jnp.float32)
    return logits.reshape(B, T, vocab)


# --------------------------------------------------------------------------
# Deterministic parameter init
# --------------------------------------------------------------------------

def _init_linear(key, k_in, k_out):
    kw, kb = jax.random.split(key)
    w = jax.random.normal(kw, (k_in, k_out), jnp.float32) * 0.02
    b = jax.random.normal(kb, (k_out,), jnp.float32) * 0.02
    return w, b


def _init_mha(key, E, num_heads):
    ks = jax.random.split(key, 4)
    d = E // num_heads
    scale = 1.0 / (d ** 0.5)
    wq, bq = _init_linear(ks[0], E, E)
    wk, bk = _init_linear(ks[1], E, E)
    wv, bv = _init_linear(ks[2], E, E)
    wo, bo = _init_linear(ks[3], E, E)
    return {
        # fused QKV weights; 1/sqrt(d) folded into the Q projection.
        "w_qkv": jnp.concatenate([wq * scale, wk, wv], axis=1),
        "b_qkv": jnp.concatenate([bq * scale, bk, bv], axis=0),
        "wo": wo, "bo": bo,
    }


def init_params(key, vocab, E, num_layers, num_heads, fe, max_len):
    keys = jax.random.split(key, 4 + num_layers)
    params = {
        "word_emb": jax.random.normal(keys[0], (vocab, E), jnp.float32) * 0.02,
        "pos_emb": jax.random.normal(keys[1], (max_len, E), jnp.float32) * 0.02,
    }
    params["w_out"], params["b_out"] = _init_linear(keys[2], E, vocab)

    layers = []
    for i in range(num_layers):
        ks = jax.random.split(keys[4 + i], 4)
        lp = {
            "self_attn": _init_mha(ks[0], E, num_heads),
            "ln_g": jnp.ones((E,), jnp.float32),
            "ln_b": jnp.zeros((E,), jnp.float32),
        }
        cb = {"attn": _init_mha(ks[1], E, num_heads)}
        cb["ln1_g"] = jnp.ones((E,), jnp.float32)
        cb["ln1_b"] = jnp.zeros((E,), jnp.float32)
        cb["ln2_g"] = jnp.ones((E,), jnp.float32)
        cb["ln2_b"] = jnp.zeros((E,), jnp.float32)
        cb["w_ff1"], cb["b_ff1"] = _init_linear(ks[2], E, fe * E)
        cb["w_ff2"], cb["b_ff2"] = _init_linear(ks[3], fe * E, E)
        lp["cross_block"] = cb
        layers.append(lp)
    params["layers"] = layers
    return params


# --------------------------------------------------------------------------
# Main
# --------------------------------------------------------------------------

if __name__ == "__main__":
    TARGET_VOCAB = 32
    EMBED = 32
    NUM_LAYERS = 2
    NUM_HEADS = 4
    FORWARD_EXPANSION = 2
    MAX_LENGTH = 16
    B, T_TGT, T_SRC = 2, 8, 10

    root = jax.random.PRNGKey(0)
    k_params, k_tok, k_src = jax.random.split(root, 3)

    params = init_params(k_params, TARGET_VOCAB, EMBED, NUM_LAYERS, NUM_HEADS,
                         FORWARD_EXPANSION, MAX_LENGTH)

    target_tokens = jax.random.randint(k_tok, (B, T_TGT), 0, TARGET_VOCAB)
    source_ctx = jax.random.normal(k_src, (B, T_SRC, EMBED), jnp.float32)

    # source mask: (B, 1, 1, S) — all tokens valid here.
    source_mask = jnp.ones((B, 1, 1, T_SRC), jnp.float32)
    # target mask: (B, 1, T, T) — causal lower-triangular.
    target_mask = jnp.broadcast_to(
        jnp.tril(jnp.ones((T_TGT, T_TGT), jnp.float32))[None, None],
        (B, 1, T_TGT, T_TGT))

    fwd = jax.jit(functools.partial(decoder_forward, num_heads=NUM_HEADS))
    logits = fwd(params, target_tokens, source_ctx, source_mask, target_mask)
    jax.block_until_ready(logits)

    assert logits.shape == (B, T_TGT, TARGET_VOCAB)
    assert bool(jnp.all(jnp.isfinite(logits)))
    print("KERNEL_OK")
</pallas_src>

<mosaic_0001>
module attributes {stable_mosaic.version = 11 : i64} {
  func.func @_linear_kernel(%arg0: i32, %arg1: i32, %arg2: i32, %arg3: memref<16x128xbf16, #tpu.memory_space<vmem>>, %arg4: memref<128x128xbf16, #tpu.memory_space<vmem>>, %arg5: memref<1x128xf32, #tpu.memory_space<vmem>>, %arg6: memref<16x128xbf16, #tpu.memory_space<vmem>>, %arg7: memref<16x128xf32, #tpu.memory_space<vmem>>) attributes {dimension_semantics = [#tpu.dimension_semantics<parallel>, #tpu.dimension_semantics<parallel>, #tpu.dimension_semantics<arbitrary>], iteration_bounds = array<i64: 1, 1, 1>, scalar_prefetch = 0 : i64, scratch_operands = 1 : i64, tpu.core_type = #tpu.core_type<tc>, window_params = [{transform_indices = @transform_0, window_bounds = array<i64: 16, 128>}, {transform_indices = @transform_1, window_bounds = array<i64: 128, 128>}, {transform_indices = @transform_2, window_bounds = array<i64: 1, 128>}, {transform_indices = @transform_3, window_bounds = array<i64: 16, 128>}]} {
    %c0_i32 = arith.constant 0 : i32
    %0 = arith.cmpi eq, %arg2, %c0_i32 : i32
    %1 = arith.extui %0 : i1 to i32
    %c0_i32_0 = arith.constant 0 : i32
    %2 = arith.cmpi ne, %1, %c0_i32_0 : i32
    scf.if %2 {
      %cst_10 = arith.constant 0.000000e+00 : f32
      %12 = vector.broadcast %cst_10 : f32 to vector<16x128xf32>
      %c0_11 = arith.constant 0 : index
      %c0_12 = arith.constant 0 : index
      %13 = vector.load %arg7[%c0_11, %c0_12] : memref<16x128xf32, #tpu.memory_space<vmem>>, vector<16x128xf32>
      tpu.vector_store %arg7[%c0_11, %c0_12], %12 {strides = array<i32>} : memref<16x128xf32, #tpu.memory_space<vmem>>, vector<16x128xf32>,
    } else {
    }
    %c0 = arith.constant 0 : index
    %c0_1 = arith.constant 0 : index
    %3 = vector.load %arg7[%c0, %c0_1] : memref<16x128xf32, #tpu.memory_space<vmem>>, vector<16x128xf32>
    %c0_2 = arith.constant 0 : index
    %c0_3 = arith.constant 0 : index
    %4 = vector.load %arg3[%c0_2, %c0_3] : memref<16x128xbf16, #tpu.memory_space<vmem>>, vector<16x128xbf16>
    %c0_4 = arith.constant 0 : index
    %c0_5 = arith.constant 0 : index
    %5 = vector.load %arg4[%c0_4, %c0_5] : memref<128x128xbf16, #tpu.memory_space<vmem>>, vector<128x128xbf16>
    %cst = arith.constant dense<0.000000e+00> : vector<16x128xf32>
    %6 = tpu.matmul %4, %5, %cst {dimension_numbers = #tpu.dot_dimension_numbers<[1], [0], [0], [1], [0, 0, 1, 1], [], []>} : vector<16x128xbf16>, vector<128x128xbf16>, vector<16x128xf32> -> vector<16x128xf32>
    %7 = arith.addf %3, %6 : vector<16x128xf32>
    %c0_6 = arith.constant 0 : index
    %c0_7 = arith.constant 0 : index
    %8 = vector.load %arg7[%c0_6, %c0_7] : memref<16x128xf32, #tpu.memory_space<vmem>>, vector<16x128xf32>
    tpu.vector_store %arg7[%c0_6, %c0_7], %7 {strides = array<i32>} : memref<16x128xf32, #tpu.memory_space<vmem>>, vector<16x128xf32>,
    %c0_i32_8 = arith.constant 0 : i32
    %9 = arith.cmpi eq, %arg2, %c0_i32_8 : i32
    %10 = arith.extui %9 : i1 to i32
    %c0_i32_9 = arith.constant 0 : i32
    %11 = arith.cmpi ne, %10, %c0_i32_9 : i32
    scf.if %11 {
      %c0_10 = arith.constant 0 : index
      %c0_11 = arith.constant 0 : index
      %12 = vector.load %arg7[%c0_10, %c0_11] : memref<16x128xf32, #tpu.memory_space<vmem>>, vector<16x128xf32>
      %c0_12 = arith.constant 0 : index
      %c0_13 = arith.constant 0 : index
      %13 = vector.load %arg5[%c0_12, %c0_13] : memref<1x128xf32, #tpu.memory_space<vmem>>, vector<1x128xf32>
      %14 = vector.broadcast %13 : vector<1x128xf32> to vector<16x128xf32>
      %15 = arith.addf %12, %14 : vector<16x128xf32>
      %16 = arith.truncf %15 : vector<16x128xf32> to vector<16x128xbf16>
      %c0_14 = arith.constant 0 : index
      %c0_15 = arith.constant 0 : index
      %17 = vector.load %arg6[%c0_14, %c0_15] : memref<16x128xbf16, #tpu.memory_space<vmem>>, vector<16x128xbf16>
      tpu.vector_store %arg6[%c0_14, %c0_15], %16 {strides = array<i32>} : memref<16x128xbf16, #tpu.memory_space<vmem>>, vector<16x128xbf16>,
    } else {
    }
    return
  }
  func.func @transform_0(%arg0: i32, %arg1: i32, %arg2: i32) -> (i32, i32) {
    %c0_i32 = arith.constant 0 : i32
    return %arg0, %arg2 : i32, i32
  }
  func.func @transform_1(%arg0: i32, %arg1: i32, %arg2: i32) -> (i32, i32) {
    %c0_i32 = arith.constant 0 : i32
    return %arg2, %arg1 : i32, i32
  }
  func.func @transform_2(%arg0: i32, %arg1: i32, %arg2: i32) -> (i32, i32) {
    %c0_i32 = arith.constant 0 : i32
    %c0_i32_0 = arith.constant 0 : i32
    return %c0_i32, %arg1 : i32, i32
  }
  func.func @transform_3(%arg0: i32, %arg1: i32, %arg2: i32) -> (i32, i32) {
    %c0_i32 = arith.constant 0 : i32
    return %arg0, %arg1 : i32, i32
  }
}

module attributes {stable_mosaic.version = 11 : i64} {
  func.func @_attention_kernel(%arg0: i32, %arg1: memref<1x16x32xbf16, #tpu.memory_space<vmem>>, %arg2: memref<1x16x32xbf16, #tpu.memory_space<vmem>>, %arg3: memref<1x16x32xbf16, #tpu.memory_space<vmem>>, %arg4: memref<1x1x16x16xf32, #tpu.memory_space<vmem>>, %arg5: memref<1x16x32xbf16, #tpu.memory_space<vmem>>) attributes {dimension_semantics = [#tpu.dimension_semantics<parallel>], iteration_bounds = array<i64: 2>, scalar_prefetch = 0 : i64, scratch_operands = 0 : i64, tpu.core_type = #tpu.core_type<tc>, window_params = [{transform_indices = @transform_0, window_bounds = array<i64: 1, 16, 32>}, {transform_indices = @transform_1, window_bounds = array<i64: 1, 16, 32>}, {transform_indices = @transform_2, window_bounds = array<i64: 1, 16, 32>}, {transform_indices = @transform_3, window_bounds = array<i64: 1, 1, 16, 16>}, {transform_indices = @transform_4, window_bounds = array<i64: 1, 16, 32>}]} {
    %c0 = arith.constant 0 : index
    %c0_0 = arith.constant 0 : index
    %c0_1 = arith.constant 0 : index
    %0 = vector.load %arg1[%c0, %c0_0, %c0_1] : memref<1x16x32xbf16, #tpu.memory_space<vmem>>, vector<1x16x32xbf16>
    %1 = vector.shape_cast %0 : vector<1x16x32xbf16> to vector<16x32xbf16>
    %c0_2 = arith.constant 0 : index
    %c0_3 = arith.constant 0 : index
    %c0_4 = arith.constant 0 : index
    %2 = vector.load %arg2[%c0_2, %c0_3, %c0_4] : memref<1x16x32xbf16, #tpu.memory_space<vmem>>, vector<1x16x32xbf16>
    %3 = vector.shape_cast %2 : vector<1x16x32xbf16> to vector<16x32xbf16>
    %c0_5 = arith.constant 0 : index
    %c0_6 = arith.constant 0 : index
    %c0_7 = arith.constant 0 : index
    %4 = vector.load %arg3[%c0_5, %c0_6, %c0_7] : memref<1x16x32xbf16, #tpu.memory_space<vmem>>, vector<1x16x32xbf16>
    %5 = vector.shape_cast %4 : vector<1x16x32xbf16> to vector<16x32xbf16>
    %c0_8 = arith.constant 0 : index
    %c0_9 = arith.constant 0 : index
    %c0_10 = arith.constant 0 : index
    %c0_11 = arith.constant 0 : index
    %6 = vector.load %arg4[%c0_8, %c0_9, %c0_10, %c0_11] : memref<1x1x16x16xf32, #tpu.memory_space<vmem>>, vector<1x1x16x16xf32>
    %7 = vector.shape_cast %6 : vector<1x1x16x16xf32> to vector<16x16xf32>
    %8 = vector.extract_strided_slice %1 {offsets = [0, 0], sizes = [16, 8], strides = [1, 1]} : vector<16x32xbf16> to vector<16x8xbf16>
    %9 = vector.extract_strided_slice %3 {offsets = [0, 0], sizes = [16, 8], strides = [1, 1]} : vector<16x32xbf16> to vector<16x8xbf16>
    %10 = vector.extract_strided_slice %5 {offsets = [0, 0], sizes = [16, 8], strides = [1, 1]} : vector<16x32xbf16> to vector<16x8xbf16>
    %cst = arith.constant dense<0.000000e+00> : vector<16x16xf32>
    %11 = tpu.matmul %8, %9, %cst {dimension_numbers = #tpu.dot_dimension_numbers<[1], [1], [0], [0], [0, 0, 1, 0], [], []>} : vector<16x8xbf16>, vector<16x8xbf16>, vector<16x16xf32> -> vector<16x16xf32>
    %cst_12 = arith.constant 0.000000e+00 : f32
    %12 = vector.broadcast %cst_12 : f32 to vector<16x16xf32>
    %13 = arith.cmpf one, %7, %12 : vector<16x16xf32>
    %cst_13 = arith.constant -1.000000e+30 : f32
    %14 = vector.broadcast %cst_13 : f32 to vector<16x16xf32>
    %15 = arith.select %13, %11, %14 : vector<16x16xi1>, vector<16x16xf32>
    %cst_14 = arith.constant dense<0xFF800000> : vector<16xf32>
    %16 = vector.multi_reduction <maximumf>, %15, %cst_14 [1] : vector<16x16xf32> to vector<16xf32>
    %17 = vector.shape_cast %16 : vector<16xf32> to vector<16x1xf32>
    %18 = vector.broadcast %17 : vector<16x1xf32> to vector<16x16xf32>
    %19 = arith.subf %15, %18 : vector<16x16xf32>
    %20 = math.exp %19 : vector<16x16xf32>
    %cst_15 = arith.constant dense<0.000000e+00> : vector<16xf32>
    %21 = vector.multi_reduction <add>, %20, %cst_15 [1] : vector<16x16xf32> to vector<16xf32>
    %22 = vector.shape_cast %21 : vector<16xf32> to vector<16x1xf32>
    %23 = tpu.reciprocal %22 {approx = true} : vector<16x1xf32> -> vector<16x1xf32>
    %24 = vector.broadcast %23 : vector<16x1xf32> to vector<16x16xf32>
    %25 = arith.mulf %20, %24 : vector<16x16xf32>
    %26 = arith.truncf %25 : vector<16x16xf32> to vector<16x16xbf16>
    %cst_16 = arith.constant dense<0.000000e+00> : vector<16x8xf32>
    %27 = tpu.matmul %26, %10, %cst_16 {dimension_numbers = #tpu.dot_dimension_numbers<[1], [0], [0], [1], [0, 0, 1, 1], [], []>} : vector<16x16xbf16>, vector<16x8xbf16>, vector<16x8xf32> -> vector<16x8xf32>
    %28 = vector.extract_strided_slice %1 {offsets = [0, 8], sizes = [16, 8], strides = [1, 1]} : vector<16x32xbf16> to vector<16x8xbf16>
    %29 = vector.extract_strided_slice %3 {offsets = [0, 8], sizes = [16, 8], strides = [1, 1]} : vector<16x32xbf16> to vector<16x8xbf16>
    %30 = vector.extract_strided_slice %5 {offsets = [0, 8], sizes = [16, 8], strides = [1, 1]} : vector<16x32xbf16> to vector<16x8xbf16>
    %cst_17 = arith.constant dense<0.000000e+00> : vector<16x16xf32>
    %31 = tpu.matmul %28, %29, %cst_17 {dimension_numbers = #tpu.dot_dimension_numbers<[1], [1], [0], [0], [0, 0, 1, 0], [], []>} : vector<16x8xbf16>, vector<16x8xbf16>, vector<16x16xf32> -> vector<16x16xf32>
    %cst_18 = arith.constant 0.000000e+00 : f32
    %32 = vector.broadcast %cst_18 : f32 to vector<16x16xf32>
    %33 = arith.cmpf one, %7, %32 : vector<16x16xf32>
    %cst_19 = arith.constant -1.000000e+30 : f32
    %34 = vector.broadcast %cst_19 : f32 to vector<16x16xf32>
    %35 = arith.select %33, %31, %34 : vector<16x16xi1>, vector<16x16xf32>
    %cst_20 = arith.constant dense<0xFF800000> : vector<16xf32>
    %36 = vector.multi_reduction <maximumf>, %35, %cst_20 [1] : vector<16x16xf32> to vector<16xf32>
    %37 = vector.shape_cast %36 : vector<16xf32> to vector<16x1xf32>
    %38 = vector.broadcast %37 : vector<16x1xf32> to vector<16x16xf32>
    %39 = arith.subf %35, %38 : vector<16x16xf32>
    %40 = math.exp %39 : vector<16x16xf32>
    %cst_21 = arith.constant dense<0.000000e+00> : vector<16xf32>
    %41 = vector.multi_reduction <add>, %40, %cst_21 [1] : vector<16x16xf32> to vector<16xf32>
    %42 = vector.shape_cast %41 : vector<16xf32> to vector<16x1xf32>
    %43 = tpu.reciprocal %42 {approx = true} : vector<16x1xf32> -> vector<16x1xf32>
    %44 = vector.broadcast %43 : vector<16x1xf32> to vector<16x16xf32>
    %45 = arith.mulf %40, %44 : vector<16x16xf32>
    %46 = arith.truncf %45 : vector<16x16xf32> to vector<16x16xbf16>
    %cst_22 = arith.constant dense<0.000000e+00> : vector<16x8xf32>
    %47 = tpu.matmul %46, %30, %cst_22 {dimension_numbers = #tpu.dot_dimension_numbers<[1], [0], [0], [1], [0, 0, 1, 1], [], []>} : vector<16x16xbf16>, vector<16x8xbf16>, vector<16x8xf32> -> vector<16x8xf32>
    %48 = vector.extract_strided_slice %1 {offsets = [0, 16], sizes = [16, 8], strides = [1, 1]} : vector<16x32xbf16> to vector<16x8xbf16>
    %49 = vector.extract_strided_slice %3 {offsets = [0, 16], sizes = [16, 8], strides = [1, 1]} : vector<16x32xbf16> to vector<16x8xbf16>
    %50 = vector.extract_strided_slice %5 {offsets = [0, 16], sizes = [16, 8], strides = [1, 1]} : vector<16x32xbf16> to vector<16x8xbf16>
    %cst_23 = arith.constant dense<0.000000e+00> : vector<16x16xf32>
    %51 = tpu.matmul %48, %49, %cst_23 {dimension_numbers = #tpu.dot_dimension_numbers<[1], [1], [0], [0], [0, 0, 1, 0], [], []>} : vector<16x8xbf16>, vector<16x8xbf16>, vector<16x16xf32> -> vector<16x16xf32>
    %cst_24 = arith.constant 0.000000e+00 : f32
    %52 = vector.broadcast %cst_24 : f32 to vector<16x16xf32>
    %53 = arith.cmpf one, %7, %52 : vector<16x16xf32>
    %cst_25 = arith.constant -1.000000e+30 : f32
    %54 = vector.broadcast %cst_25 : f32 to vector<16x16xf32>
    %55 = arith.select %53, %51, %54 : vector<16x16xi1>, vector<16x16xf32>
    %cst_26 = arith.constant dense<0xFF800000> : vector<16xf32>
    %56 = vector.multi_reduction <maximumf>, %55, %cst_26 [1] : vector<16x16xf32> to vector<16xf32>
    %57 = vector.shape_cast %56 : vector<16xf32> to vector<16x1xf32>
    %58 = vector.broadcast %57 : vector<16x1xf32> to vector<16x16xf32>
    %59 = arith.subf %55, %58 : vector<16x16xf32>
    %60 = math.exp %59 : vector<16x16xf32>
    %cst_27 = arith.constant dense<0.000000e+00> : vector<16xf32>
    %61 = vector.multi_reduction <add>, %60, %cst_27 [1] : vector<16x16xf32> to vector<16xf32>
    %62 = vector.shape_cast %61 : vector<16xf32> to vector<16x1xf32>
    %63 = tpu.reciprocal %62 {approx = true} : vector<16x1xf32> -> vector<16x1xf32>
    %64 = vector.broadcast %63 : vector<16x1xf32> to vector<16x16xf32>
    %65 = arith.mulf %60, %64 : vector<16x16xf32>
    %66 = arith.truncf %65 : vector<16x16xf32> to vector<16x16xbf16>
    %cst_28 = arith.constant dense<0.000000e+00> : vector<16x8xf32>
    %67 = tpu.matmul %66, %50, %cst_28 {dimension_numbers = #tpu.dot_dimension_numbers<[1], [0], [0], [1], [0, 0, 1, 1], [], []>} : vector<16x16xbf16>, vector<16x8xbf16>, vector<16x8xf32> -> vector<16x8xf32>
    %68 = vector.extract_strided_slice %1 {offsets = [0, 24], sizes = [16, 8], strides = [1, 1]} : vector<16x32xbf16> to vector<16x8xbf16>
    %69 = vector.extract_strided_slice %3 {offsets = [0, 24], sizes = [16, 8], strides = [1, 1]} : vector<16x32xbf16> to vector<16x8xbf16>
    %70 = vector.extract_strided_slice %5 {offsets = [0, 24], sizes = [16, 8], strides = [1, 1]} : vector<16x32xbf16> to vector<16x8xbf16>
    %cst_29 = arith.constant dense<0.000000e+00> : vector<16x16xf32>
    %71 = tpu.matmul %68, %69, %cst_29 {dimension_numbers = #tpu.dot_dimension_numbers<[1], [1], [0], [0], [0, 0, 1, 0], [], []>} : vector<16x8xbf16>, vector<16x8xbf16>, vector<16x16xf32> -> vector<16x16xf32>
    %cst_30 = arith.constant 0.000000e+00 : f32
    %72 = vector.broadcast %cst_30 : f32 to vector<16x16xf32>
    %73 = arith.cmpf one, %7, %72 : vector<16x16xf32>
    %cst_31 = arith.constant -1.000000e+30 : f32
    %74 = vector.broadcast %cst_31 : f32 to vector<16x16xf32>
    %75 = arith.select %73, %71, %74 : vector<16x16xi1>, vector<16x16xf32>
    %cst_32 = arith.constant dense<0xFF800000> : vector<16xf32>
    %76 = vector.multi_reduction <maximumf>, %75, %cst_32 [1] : vector<16x16xf32> to vector<16xf32>
    %77 = vector.shape_cast %76 : vector<16xf32> to vector<16x1xf32>
    %78 = vector.broadcast %77 : vector<16x1xf32> to vector<16x16xf32>
    %79 = arith.subf %75, %78 : vector<16x16xf32>
    %80 = math.exp %79 : vector<16x16xf32>
    %cst_33 = arith.constant dense<0.000000e+00> : vector<16xf32>
    %81 = vector.multi_reduction <add>, %80, %cst_33 [1] : vector<16x16xf32> to vector<16xf32>
    %82 = vector.shape_cast %81 : vector<16xf32> to vector<16x1xf32>
    %83 = tpu.reciprocal %82 {approx = true} : vector<16x1xf32> -> vector<16x1xf32>
    %84 = vector.broadcast %83 : vector<16x1xf32> to vector<16x16xf32>
    %85 = arith.mulf %80, %84 : vector<16x16xf32>
    %86 = arith.truncf %85 : vector<16x16xf32> to vector<16x16xbf16>
    %cst_34 = arith.constant dense<0.000000e+00> : vector<16x8xf32>
    %87 = tpu.matmul %86, %70, %cst_34 {dimension_numbers = #tpu.dot_dimension_numbers<[1], [0], [0], [1], [0, 0, 1, 1], [], []>} : vector<16x16xbf16>, vector<16x8xbf16>, vector<16x8xf32> -> vector<16x8xf32>
    %88 = tpu.concatenate %27, %47, %67, %87 in 1 : vector<16x8xf32>, vector<16x8xf32>, vector<16x8xf32>, vector<16x8xf32> -> vector<16x32xf32>
    %89 = arith.truncf %88 : vector<16x32xf32> to vector<16x32xbf16>
    %c0_35 = arith.constant 0 : index
    %c0_36 = arith.constant 0 : index
    %c0_37 = arith.constant 0 : index
    %90 = vector.load %arg5[%c0_35, %c0_36, %c0_37] : memref<1x16x32xbf16, #tpu.memory_space<vmem>>, vector<1x16x32xbf16>
    %91 = vector.shape_cast %90 : vector<1x16x32xbf16> to vector<16x32xbf16>
    %92 = vector.shape_cast %89 : vector<16x32xbf16> to vector<1x16x32xbf16>
    tpu.vector_store %arg5[%c0_35, %c0_36, %c0_37], %92 {strides = array<i32>} : memref<1x16x32xbf16, #tpu.memory_space<vmem>>, vector<1x16x32xbf16>,
    return
  }
  func.func @transform_0(%arg0: i32) -> (i32, i32, i32) {
    %c0_i32 = arith.constant 0 : i32
    %c0_i32_0 = arith.constant 0 : i32
    %c0_i32_1 = arith.constant 0 : i32
    return %arg0, %c0_i32, %c0_i32_0 : i32, i32, i32
  }
  func.func @transform_1(%arg0: i32) -> (i32, i32, i32) {
    %c0_i32 = arith.constant 0 : i32
    %c0_i32_0 = arith.constant 0 : i32
    %c0_i32_1 = arith.constant 0 : i32
    return %arg0, %c0_i32, %c0_i32_0 : i32, i32, i32
  }
  func.func @transform_2(%arg0: i32) -> (i32, i32, i32) {
    %c0_i32 = arith.constant 0 : i32
    %c0_i32_0 = arith.constant 0 : i32
    %c0_i32_1 = arith.constant 0 : i32
    return %arg0, %c0_i32, %c0_i32_0 : i32, i32, i32
  }
  func.func @transform_3(%arg0: i32) -> (i32, i32, i32, i32) {
    %c0_i32 = arith.constant 0 : i32
    %c0_i32_0 = arith.constant 0 : i32
    %c0_i32_1 = arith.constant 0 : i32
    %c0_i32_2 = arith.constant 0 : i32
    return %arg0, %c0_i32, %c0_i32_0, %c0_i32_1 : i32, i32, i32, i32
  }
  func.func @transform_4(%arg0: i32) -> (i32, i32, i32) {
    %c0_i32 = arith.constant 0 : i32
    %c0_i32_0 = arith.constant 0 : i32
    %c0_i32_1 = arith.constant 0 : i32
    return %arg0, %c0_i32, %c0_i32_0 : i32, i32, i32
  }
}

module attributes {stable_mosaic.version = 11 : i64} {
  func.func @_add_layernorm_kernel(%arg0: i32, %arg1: memref<16x32xbf16, #tpu.memory_space<vmem>>, %arg2: memref<16x32xbf16, #tpu.memory_space<vmem>>, %arg3: memref<1x32xf32, #tpu.memory_space<vmem>>, %arg4: memref<1x32xf32, #tpu.memory_space<vmem>>, %arg5: memref<16x32xbf16, #tpu.memory_space<vmem>>) attributes {dimension_semantics = [#tpu.dimension_semantics<parallel>], iteration_bounds = array<i64: 1>, scalar_prefetch = 0 : i64, scratch_operands = 0 : i64, tpu.core_type = #tpu.core_type<tc>, window_params = [{transform_indices = @transform_0, window_bounds = array<i64: 16, 32>}, {transform_indices = @transform_1, window_bounds = array<i64: 16, 32>}, {pipeline_mode = #tpu.pipeline_mode<synchronous>, transform_indices = @transform_2, window_bounds = array<i64: 1, 32>}, {pipeline_mode = #tpu.pipeline_mode<synchronous>, transform_indices = @transform_3, window_bounds = array<i64: 1, 32>}, {transform_indices = @transform_4, window_bounds = array<i64: 16, 32>}]} {
    %c0 = arith.constant 0 : index
    %c0_0 = arith.constant 0 : index
    %0 = vector.load %arg1[%c0, %c0_0] : memref<16x32xbf16, #tpu.memory_space<vmem>>, vector<16x32xbf16>
    %1 = arith.extf %0 : vector<16x32xbf16> to vector<16x32xf32>
    %c0_1 = arith.constant 0 : index
    %c0_2 = arith.constant 0 : index
    %2 = vector.load %arg2[%c0_1, %c0_2] : memref<16x32xbf16, #tpu.memory_space<vmem>>, vector<16x32xbf16>
    %3 = arith.extf %2 : vector<16x32xbf16> to vector<16x32xf32>
    %4 = arith.addf %1, %3 : vector<16x32xf32>
    %cst = arith.constant dense<0.000000e+00> : vector<16xf32>
    %5 = vector.multi_reduction <add>, %4, %cst [1] : vector<16x32xf32> to vector<16xf32>
    %6 = vector.shape_cast %5 : vector<16xf32> to vector<16x1xf32>
    %cst_3 = arith.constant 3.200000e+01 : f32
    %7 = vector.broadcast %cst_3 : f32 to vector<16x1xf32>
    %8 = arith.divf %6, %7 : vector<16x1xf32>
    %9 = vector.broadcast %8 : vector<16x1xf32> to vector<16x32xf32>
    %10 = arith.subf %4, %9 : vector<16x32xf32>
    %11 = arith.mulf %10, %10 : vector<16x32xf32>
    %cst_4 = arith.constant dense<0.000000e+00> : vector<16xf32>
    %12 = vector.multi_reduction <add>, %11, %cst_4 [1] : vector<16x32xf32> to vector<16xf32>
    %13 = vector.shape_cast %12 : vector<16xf32> to vector<16x1xf32>
    %cst_5 = arith.constant 3.200000e+01 : f32
    %14 = vector.broadcast %cst_5 : f32 to vector<16x1xf32>
    %15 = arith.divf %13, %14 : vector<16x1xf32>
    %16 = vector.broadcast %8 : vector<16x1xf32> to vector<16x32xf32>
    %17 = arith.subf %4, %16 : vector<16x32xf32>
    %cst_6 = arith.constant 9.99999974E-6 : f32
    %18 = vector.broadcast %cst_6 : f32 to vector<16x1xf32>
    %19 = arith.addf %15, %18 : vector<16x1xf32>
    %20 = math.rsqrt %19 : vector<16x1xf32>
    %21 = vector.broadcast %20 : vector<16x1xf32> to vector<16x32xf32>
    %22 = arith.mulf %17, %21 : vector<16x32xf32>
    %c0_7 = arith.constant 0 : index
    %c0_8 = arith.constant 0 : index
    %23 = vector.load %arg3[%c0_7, %c0_8] : memref<1x32xf32, #tpu.memory_space<vmem>>, vector<1x32xf32>
    %24 = vector.broadcast %23 : vector<1x32xf32> to vector<16x32xf32>
    %25 = arith.mulf %22, %24 : vector<16x32xf32>
    %c0_9 = arith.constant 0 : index
    %c0_10 = arith.constant 0 : index
    %26 = vector.load %arg4[%c0_9, %c0_10] : memref<1x32xf32, #tpu.memory_space<vmem>>, vector<1x32xf32>
    %27 = vector.broadcast %26 : vector<1x32xf32> to vector<16x32xf32>
    %28 = arith.addf %25, %27 : vector<16x32xf32>
    %29 = arith.truncf %28 : vector<16x32xf32> to vector<16x32xbf16>
    %c0_11 = arith.constant 0 : index
    %c0_12 = arith.constant 0 : index
    %30 = vector.load %arg5[%c0_11, %c0_12] : memref<16x32xbf16, #tpu.memory_space<vmem>>, vector<16x32xbf16>
    tpu.vector_store %arg5[%c0_11, %c0_12], %29 {strides = array<i32>} : memref<16x32xbf16, #tpu.memory_space<vmem>>, vector<16x32xbf16>,
    return
  }
  func.func @transform_0(%arg0: i32) -> (i32, i32) {
    %c0_i32 = arith.constant 0 : i32
    %c0_i32_0 = arith.constant 0 : i32
    return %arg0, %c0_i32 : i32, i32
  }
  func.func @transform_1(%arg0: i32) -> (i32, i32) {
    %c0_i32 = arith.constant 0 : i32
    %c0_i32_0 = arith.constant 0 : i32
    return %arg0, %c0_i32 : i32, i32
  }
  func.func @transform_2(%arg0: i32) -> (i32, i32) {
    %c0_i32 = arith.constant 0 : i32
    %c0_i32_0 = arith.constant 0 : i32
    %c0_i32_1 = arith.constant 0 : i32
    return %c0_i32, %c0_i32_0 : i32, i32
  }
  func.func @transform_3(%arg0: i32) -> (i32, i32) {
    %c0_i32 = arith.constant 0 : i32
    %c0_i32_0 = arith.constant 0 : i32
    %c0_i32_1 = arith.constant 0 : i32
    return %c0_i32, %c0_i32_0 : i32, i32
  }
  func.func @transform_4(%arg0: i32) -> (i32, i32) {
    %c0_i32 = arith.constant 0 : i32
    %c0_i32_0 = arith.constant 0 : i32
    return %arg0, %c0_i32 : i32, i32
  }
}

module attributes {stable_mosaic.version = 11 : i64} {
  func.func @_linear_kernel(%arg0: i32, %arg1: i32, %arg2: i32, %arg3: memref<32x128xbf16, #tpu.memory_space<vmem>>, %arg4: memref<128x128xbf16, #tpu.memory_space<vmem>>, %arg5: memref<1x128xf32, #tpu.memory_space<vmem>>, %arg6: memref<32x128xbf16, #tpu.memory_space<vmem>>, %arg7: memref<32x128xf32, #tpu.memory_space<vmem>>) attributes {dimension_semantics = [#tpu.dimension_semantics<parallel>, #tpu.dimension_semantics<parallel>, #tpu.dimension_semantics<arbitrary>], iteration_bounds = array<i64: 1, 1, 1>, scalar_prefetch = 0 : i64, scratch_operands = 1 : i64, tpu.core_type = #tpu.core_type<tc>, window_params = [{transform_indices = @transform_0, window_bounds = array<i64: 32, 128>}, {transform_indices = @transform_1, window_bounds = array<i64: 128, 128>}, {transform_indices = @transform_2, window_bounds = array<i64: 1, 128>}, {transform_indices = @transform_3, window_bounds = array<i64: 32, 128>}]} {
    %c0_i32 = arith.constant 0 : i32
    %0 = arith.cmpi eq, %arg2, %c0_i32 : i32
    %1 = arith.extui %0 : i1 to i32
    %c0_i32_0 = arith.constant 0 : i32
    %2 = arith.cmpi ne, %1, %c0_i32_0 : i32
    scf.if %2 {
      %cst_10 = arith.constant 0.000000e+00 : f32
      %12 = vector.broadcast %cst_10 : f32 to vector<32x128xf32>
      %c0_11 = arith.constant 0 : index
      %c0_12 = arith.constant 0 : index
      %13 = vector.load %arg7[%c0_11, %c0_12] : memref<32x128xf32, #tpu.memory_space<vmem>>, vector<32x128xf32>
      tpu.vector_store %arg7[%c0_11, %c0_12], %12 {strides = array<i32>} : memref<32x128xf32, #tpu.memory_space<vmem>>, vector<32x128xf32>,
    } else {
    }
    %c0 = arith.constant 0 : index
    %c0_1 = arith.constant 0 : index
    %3 = vector.load %arg7[%c0, %c0_1] : memref<32x128xf32, #tpu.memory_space<vmem>>, vector<32x128xf32>
    %c0_2 = arith.constant 0 : index
    %c0_3 = arith.constant 0 : index
    %4 = vector.load %arg3[%c0_2, %c0_3] : memref<32x128xbf16, #tpu.memory_space<vmem>>, vector<32x128xbf16>
    %c0_4 = arith.constant 0 : index
    %c0_5 = arith.constant 0 : index
    %5 = vector.load %arg4[%c0_4, %c0_5] : memref<128x128xbf16, #tpu.memory_space<vmem>>, vector<128x128xbf16>
    %cst = arith.constant dense<0.000000e+00> : vector<32x128xf32>
    %6 = tpu.matmul %4, %5, %cst {dimension_numbers = #tpu.dot_dimension_numbers<[1], [0], [0], [1], [0, 0, 1, 1], [], []>} : vector<32x128xbf16>, vector<128x128xbf16>, vector<32x128xf32> -> vector<32x128xf32>
    %7 = arith.addf %3, %6 : vector<32x128xf32>
    %c0_6 = arith.constant 0 : index
    %c0_7 = arith.constant 0 : index
    %8 = vector.load %arg7[%c0_6, %c0_7] : memref<32x128xf32, #tpu.memory_space<vmem>>, vector<32x128xf32>
    tpu.vector_store %arg7[%c0_6, %c0_7], %7 {strides = array<i32>} : memref<32x128xf32, #tpu.memory_space<vmem>>, vector<32x128xf32>,
    %c0_i32_8 = arith.constant 0 : i32
    %9 = arith.cmpi eq, %arg2, %c0_i32_8 : i32
    %10 = arith.extui %9 : i1 to i32
    %c0_i32_9 = arith.constant 0 : i32
    %11 = arith.cmpi ne, %10, %c0_i32_9 : i32
    scf.if %11 {
      %c0_10 = arith.constant 0 : index
      %c0_11 = arith.constant 0 : index
      %12 = vector.load %arg7[%c0_10, %c0_11] : memref<32x128xf32, #tpu.memory_space<vmem>>, vector<32x128xf32>
      %c0_12 = arith.constant 0 : index
      %c0_13 = arith.constant 0 : index
      %13 = vector.load %arg5[%c0_12, %c0_13] : memref<1x128xf32, #tpu.memory_space<vmem>>, vector<1x128xf32>
      %14 = vector.broadcast %13 : vector<1x128xf32> to vector<32x128xf32>
      %15 = arith.addf %12, %14 : vector<32x128xf32>
      %16 = arith.truncf %15 : vector<32x128xf32> to vector<32x128xbf16>
      %c0_14 = arith.constant 0 : index
      %c0_15 = arith.constant 0 : index
      %17 = vector.load %arg6[%c0_14, %c0_15] : memref<32x128xbf16, #tpu.memory_space<vmem>>, vector<32x128xbf16>
      tpu.vector_store %arg6[%c0_14, %c0_15], %16 {strides = array<i32>} : memref<32x128xbf16, #tpu.memory_space<vmem>>, vector<32x128xbf16>,
    } else {
    }
    return
  }
  func.func @transform_0(%arg0: i32, %arg1: i32, %arg2: i32) -> (i32, i32) {
    %c0_i32 = arith.constant 0 : i32
    return %arg0, %arg2 : i32, i32
  }
  func.func @transform_1(%arg0: i32, %arg1: i32, %arg2: i32) -> (i32, i32) {
    %c0_i32 = arith.constant 0 : i32
    return %arg2, %arg1 : i32, i32
  }
  func.func @transform_2(%arg0: i32, %arg1: i32, %arg2: i32) -> (i32, i32) {
    %c0_i32 = arith.constant 0 : i32
    %c0_i32_0 = arith.constant 0 : i32
    return %c0_i32, %arg1 : i32, i32
  }
  func.func @transform_3(%arg0: i32, %arg1: i32, %arg2: i32) -> (i32, i32) {
    %c0_i32 = arith.constant 0 : i32
    return %arg0, %arg1 : i32, i32
  }
}

module attributes {stable_mosaic.version = 11 : i64} {
  func.func @_attention_kernel(%arg0: i32, %arg1: memref<1x16x32xbf16, #tpu.memory_space<vmem>>, %arg2: memref<1x16x32xbf16, #tpu.memory_space<vmem>>, %arg3: memref<1x16x32xbf16, #tpu.memory_space<vmem>>, %arg4: memref<1x1x1x16xf32, #tpu.memory_space<vmem>>, %arg5: memref<1x16x32xbf16, #tpu.memory_space<vmem>>) attributes {dimension_semantics = [#tpu.dimension_semantics<parallel>], iteration_bounds = array<i64: 2>, scalar_prefetch = 0 : i64, scratch_operands = 0 : i64, tpu.core_type = #tpu.core_type<tc>, window_params = [{transform_indices = @transform_0, window_bounds = array<i64: 1, 16, 32>}, {transform_indices = @transform_1, window_bounds = array<i64: 1, 16, 32>}, {transform_indices = @transform_2, window_bounds = array<i64: 1, 16, 32>}, {transform_indices = @transform_3, window_bounds = array<i64: 1, 1, 1, 16>}, {transform_indices = @transform_4, window_bounds = array<i64: 1, 16, 32>}]} {
    %c0 = arith.constant 0 : index
    %c0_0 = arith.constant 0 : index
    %c0_1 = arith.constant 0 : index
    %0 = vector.load %arg1[%c0, %c0_0, %c0_1] : memref<1x16x32xbf16, #tpu.memory_space<vmem>>, vector<1x16x32xbf16>
    %1 = vector.shape_cast %0 : vector<1x16x32xbf16> to vector<16x32xbf16>
    %c0_2 = arith.constant 0 : index
    %c0_3 = arith.constant 0 : index
    %c0_4 = arith.constant 0 : index
    %2 = vector.load %arg2[%c0_2, %c0_3, %c0_4] : memref<1x16x32xbf16, #tpu.memory_space<vmem>>, vector<1x16x32xbf16>
    %3 = vector.shape_cast %2 : vector<1x16x32xbf16> to vector<16x32xbf16>
    %c0_5 = arith.constant 0 : index
    %c0_6 = arith.constant 0 : index
    %c0_7 = arith.constant 0 : index
    %4 = vector.load %arg3[%c0_5, %c0_6, %c0_7] : memref<1x16x32xbf16, #tpu.memory_space<vmem>>, vector<1x16x32xbf16>
    %5 = vector.shape_cast %4 : vector<1x16x32xbf16> to vector<16x32xbf16>
    %c0_8 = arith.constant 0 : index
    %c0_9 = arith.constant 0 : index
    %c0_10 = arith.constant 0 : index
    %c0_11 = arith.constant 0 : index
    %6 = vector.load %arg4[%c0_8, %c0_9, %c0_10, %c0_11] : memref<1x1x1x16xf32, #tpu.memory_space<vmem>>, vector<1x1x1x16xf32>
    %7 = vector.shape_cast %6 : vector<1x1x1x16xf32> to vector<1x16xf32>
    %8 = vector.extract_strided_slice %1 {offsets = [0, 0], sizes = [16, 8], strides = [1, 1]} : vector<16x32xbf16> to vector<16x8xbf16>
    %9 = vector.extract_strided_slice %3 {offsets = [0, 0], sizes = [16, 8], strides = [1, 1]} : vector<16x32xbf16> to vector<16x8xbf16>
    %10 = vector.extract_strided_slice %5 {offsets = [0, 0], sizes = [16, 8], strides = [1, 1]} : vector<16x32xbf16> to vector<16x8xbf16>
    %cst = arith.constant dense<0.000000e+00> : vector<16x16xf32>
    %11 = tpu.matmul %8, %9, %cst {dimension_numbers = #tpu.dot_dimension_numbers<[1], [1], [0], [0], [0, 0, 1, 0], [], []>} : vector<16x8xbf16>, vector<16x8xbf16>, vector<16x16xf32> -> vector<16x16xf32>
    %cst_12 = arith.constant 0.000000e+00 : f32
    %12 = vector.broadcast %cst_12 : f32 to vector<1x16xf32>
    %13 = arith.cmpf one, %7, %12 : vector<1x16xf32>
    %cst_13 = arith.constant -1.000000e+30 : f32
    %14 = vector.shape_cast %13 : vector<1x16xi1> to vector<1x16xi1>
    %15 = vector.broadcast %14 : vector<1x16xi1> to vector<16x16xi1>
    %16 = vector.broadcast %cst_13 : f32 to vector<16x16xf32>
    %17 = arith.select %15, %11, %16 : vector<16x16xi1>, vector<16x16xf32>
    %cst_14 = arith.constant dense<0xFF800000> : vector<16xf32>
    %18 = vector.multi_reduction <maximumf>, %17, %cst_14 [1] : vector<16x16xf32> to vector<16xf32>
    %19 = vector.shape_cast %18 : vector<16xf32> to vector<16x1xf32>
    %20 = vector.broadcast %19 : vector<16x1xf32> to vector<16x16xf32>
    %21 = arith.subf %17, %20 : vector<16x16xf32>
    %22 = math.exp %21 : vector<16x16xf32>
    %cst_15 = arith.constant dense<0.000000e+00> : vector<16xf32>
    %23 = vector.multi_reduction <add>, %22, %cst_15 [1] : vector<16x16xf32> to vector<16xf32>
    %24 = vector.shape_cast %23 : vector<16xf32> to vector<16x1xf32>
    %25 = tpu.reciprocal %24 {approx = true} : vector<16x1xf32> -> vector<16x1xf32>
    %26 = vector.broadcast %25 : vector<16x1xf32> to vector<16x16xf32>
    %27 = arith.mulf %22, %26 : vector<16x16xf32>
    %28 = arith.truncf %27 : vector<16x16xf32> to vector<16x16xbf16>
    %cst_16 = arith.constant dense<0.000000e+00> : vector<16x8xf32>
    %29 = tpu.matmul %28, %10, %cst_16 {dimension_numbers = #tpu.dot_dimension_numbers<[1], [0], [0], [1], [0, 0, 1, 1], [], []>} : vector<16x16xbf16>, vector<16x8xbf16>, vector<16x8xf32> -> vector<16x8xf32>
    %30 = vector.extract_strided_slice %1 {offsets = [0, 8], sizes = [16, 8], strides = [1, 1]} : vector<16x32xbf16> to vector<16x8xbf16>
    %31 = vector.extract_strided_slice %3 {offsets = [0, 8], sizes = [16, 8], strides = [1, 1]} : vector<16x32xbf16> to vector<16x8xbf16>
    %32 = vector.extract_strided_slice %5 {offsets = [0, 8], sizes = [16, 8], strides = [1, 1]} : vector<16x32xbf16> to vector<16x8xbf16>
    %cst_17 = arith.constant dense<0.000000e+00> : vector<16x16xf32>
    %33 = tpu.matmul %30, %31, %cst_17 {dimension_numbers = #tpu.dot_dimension_numbers<[1], [1], [0], [0], [0, 0, 1, 0], [], []>} : vector<16x8xbf16>, vector<16x8xbf16>, vector<16x16xf32> -> vector<16x16xf32>
    %cst_18 = arith.constant 0.000000e+00 : f32
    %34 = vector.broadcast %cst_18 : f32 to vector<1x16xf32>
    %35 = arith.cmpf one, %7, %34 : vector<1x16xf32>
    %cst_19 = arith.constant -1.000000e+30 : f32
    %36 = vector.shape_cast %35 : vector<1x16xi1> to vector<1x16xi1>
    %37 = vector.broadcast %36 : vector<1x16xi1> to vector<16x16xi1>
    %38 = vector.broadcast %cst_19 : f32 to vector<16x16xf32>
    %39 = arith.select %37, %33, %38 : vector<16x16xi1>, vector<16x16xf32>
    %cst_20 = arith.constant dense<0xFF800000> : vector<16xf32>
    %40 = vector.multi_reduction <maximumf>, %39, %cst_20 [1] : vector<16x16xf32> to vector<16xf32>
    %41 = vector.shape_cast %40 : vector<16xf32> to vector<16x1xf32>
    %42 = vector.broadcast %41 : vector<16x1xf32> to vector<16x16xf32>
    %43 = arith.subf %39, %42 : vector<16x16xf32>
    %44 = math.exp %43 : vector<16x16xf32>
    %cst_21 = arith.constant dense<0.000000e+00> : vector<16xf32>
    %45 = vector.multi_reduction <add>, %44, %cst_21 [1] : vector<16x16xf32> to vector<16xf32>
    %46 = vector.shape_cast %45 : vector<16xf32> to vector<16x1xf32>
    %47 = tpu.reciprocal %46 {approx = true} : vector<16x1xf32> -> vector<16x1xf32>
    %48 = vector.broadcast %47 : vector<16x1xf32> to vector<16x16xf32>
    %49 = arith.mulf %44, %48 : vector<16x16xf32>
    %50 = arith.truncf %49 : vector<16x16xf32> to vector<16x16xbf16>
    %cst_22 = arith.constant dense<0.000000e+00> : vector<16x8xf32>
    %51 = tpu.matmul %50, %32, %cst_22 {dimension_numbers = #tpu.dot_dimension_numbers<[1], [0], [0], [1], [0, 0, 1, 1], [], []>} : vector<16x16xbf16>, vector<16x8xbf16>, vector<16x8xf32> -> vector<16x8xf32>
    %52 = vector.extract_strided_slice %1 {offsets = [0, 16], sizes = [16, 8], strides = [1, 1]} : vector<16x32xbf16> to vector<16x8xbf16>
    %53 = vector.extract_strided_slice %3 {offsets = [0, 16], sizes = [16, 8], strides = [1, 1]} : vector<16x32xbf16> to vector<16x8xbf16>
    %54 = vector.extract_strided_slice %5 {offsets = [0, 16], sizes = [16, 8], strides = [1, 1]} : vector<16x32xbf16> to vector<16x8xbf16>
    %cst_23 = arith.constant dense<0.000000e+00> : vector<16x16xf32>
    %55 = tpu.matmul %52, %53, %cst_23 {dimension_numbers = #tpu.dot_dimension_numbers<[1], [1], [0], [0], [0, 0, 1, 0], [], []>} : vector<16x8xbf16>, vector<16x8xbf16>, vector<16x16xf32> -> vector<16x16xf32>
    %cst_24 = arith.constant 0.000000e+00 : f32
    %56 = vector.broadcast %cst_24 : f32 to vector<1x16xf32>
    %57 = arith.cmpf one, %7, %56 : vector<1x16xf32>
    %cst_25 = arith.constant -1.000000e+30 : f32
    %58 = vector.shape_cast %57 : vector<1x16xi1> to vector<1x16xi1>
    %59 = vector.broadcast %58 : vector<1x16xi1> to vector<16x16xi1>
    %60 = vector.broadcast %cst_25 : f32 to vector<16x16xf32>
    %61 = arith.select %59, %55, %60 : vector<16x16xi1>, vector<16x16xf32>
    %cst_26 = arith.constant dense<0xFF800000> : vector<16xf32>
    %62 = vector.multi_reduction <maximumf>, %61, %cst_26 [1] : vector<16x16xf32> to vector<16xf32>
    %63 = vector.shape_cast %62 : vector<16xf32> to vector<16x1xf32>
    %64 = vector.broadcast %63 : vector<16x1xf32> to vector<16x16xf32>
    %65 = arith.subf %61, %64 : vector<16x16xf32>
    %66 = math.exp %65 : vector<16x16xf32>
    %cst_27 = arith.constant dense<0.000000e+00> : vector<16xf32>
    %67 = vector.multi_reduction <add>, %66, %cst_27 [1] : vector<16x16xf32> to vector<16xf32>
    %68 = vector.shape_cast %67 : vector<16xf32> to vector<16x1xf32>
    %69 = tpu.reciprocal %68 {approx = true} : vector<16x1xf32> -> vector<16x1xf32>
    %70 = vector.broadcast %69 : vector<16x1xf32> to vector<16x16xf32>
    %71 = arith.mulf %66, %70 : vector<16x16xf32>
    %72 = arith.truncf %71 : vector<16x16xf32> to vector<16x16xbf16>
    %cst_28 = arith.constant dense<0.000000e+00> : vector<16x8xf32>
    %73 = tpu.matmul %72, %54, %cst_28 {dimension_numbers = #tpu.dot_dimension_numbers<[1], [0], [0], [1], [0, 0, 1, 1], [], []>} : vector<16x16xbf16>, vector<16x8xbf16>, vector<16x8xf32> -> vector<16x8xf32>
    %74 = vector.extract_strided_slice %1 {offsets = [0, 24], sizes = [16, 8], strides = [1, 1]} : vector<16x32xbf16> to vector<16x8xbf16>
    %75 = vector.extract_strided_slice %3 {offsets = [0, 24], sizes = [16, 8], strides = [1, 1]} : vector<16x32xbf16> to vector<16x8xbf16>
    %76 = vector.extract_strided_slice %5 {offsets = [0, 24], sizes = [16, 8], strides = [1, 1]} : vector<16x32xbf16> to vector<16x8xbf16>
    %cst_29 = arith.constant dense<0.000000e+00> : vector<16x16xf32>
    %77 = tpu.matmul %74, %75, %cst_29 {dimension_numbers = #tpu.dot_dimension_numbers<[1], [1], [0], [0], [0, 0, 1, 0], [], []>} : vector<16x8xbf16>, vector<16x8xbf16>, vector<16x16xf32> -> vector<16x16xf32>
    %cst_30 = arith.constant 0.000000e+00 : f32
    %78 = vector.broadcast %cst_30 : f32 to vector<1x16xf32>
    %79 = arith.cmpf one, %7, %78 : vector<1x16xf32>
    %cst_31 = arith.constant -1.000000e+30 : f32
    %80 = vector.shape_cast %79 : vector<1x16xi1> to vector<1x16xi1>
    %81 = vector.broadcast %80 : vector<1x16xi1> to vector<16x16xi1>
    %82 = vector.broadcast %cst_31 : f32 to vector<16x16xf32>
    %83 = arith.select %81, %77, %82 : vector<16x16xi1>, vector<16x16xf32>
    %cst_32 = arith.constant dense<0xFF800000> : vector<16xf32>
    %84 = vector.multi_reduction <maximumf>, %83, %cst_32 [1] : vector<16x16xf32> to vector<16xf32>
    %85 = vector.shape_cast %84 : vector<16xf32> to vector<16x1xf32>
    %86 = vector.broadcast %85 : vector<16x1xf32> to vector<16x16xf32>
    %87 = arith.subf %83, %86 : vector<16x16xf32>
    %88 = math.exp %87 : vector<16x16xf32>
    %cst_33 = arith.constant dense<0.000000e+00> : vector<16xf32>
    %89 = vector.multi_reduction <add>, %88, %cst_33 [1] : vector<16x16xf32> to vector<16xf32>
    %90 = vector.shape_cast %89 : vector<16xf32> to vector<16x1xf32>
    %91 = tpu.reciprocal %90 {approx = true} : vector<16x1xf32> -> vector<16x1xf32>
    %92 = vector.broadcast %91 : vector<16x1xf32> to vector<16x16xf32>
    %93 = arith.mulf %88, %92 : vector<16x16xf32>
    %94 = arith.truncf %93 : vector<16x16xf32> to vector<16x16xbf16>
    %cst_34 = arith.constant dense<0.000000e+00> : vector<16x8xf32>
    %95 = tpu.matmul %94, %76, %cst_34 {dimension_numbers = #tpu.dot_dimension_numbers<[1], [0], [0], [1], [0, 0, 1, 1], [], []>} : vector<16x16xbf16>, vector<16x8xbf16>, vector<16x8xf32> -> vector<16x8xf32>
    %96 = tpu.concatenate %29, %51, %73, %95 in 1 : vector<16x8xf32>, vector<16x8xf32>, vector<16x8xf32>, vector<16x8xf32> -> vector<16x32xf32>
    %97 = arith.truncf %96 : vector<16x32xf32> to vector<16x32xbf16>
    %c0_35 = arith.constant 0 : index
    %c0_36 = arith.constant 0 : index
    %c0_37 = arith.constant 0 : index
    %98 = vector.load %arg5[%c0_35, %c0_36, %c0_37] : memref<1x16x32xbf16, #tpu.memory_space<vmem>>, vector<1x16x32xbf16>
    %99 = vector.shape_cast %98 : vector<1x16x32xbf16> to vector<16x32xbf16>
    %100 = vector.shape_cast %97 : vector<16x32xbf16> to vector<1x16x32xbf16>
    tpu.vector_store %arg5[%c0_35, %c0_36, %c0_37], %100 {strides = array<i32>} : memref<1x16x32xbf16, #tpu.memory_space<vmem>>, vector<1x16x32xbf16>,
    return
  }
  func.func @transform_0(%arg0: i32) -> (i32, i32, i32) {
    %c0_i32 = arith.constant 0 : i32
    %c0_i32_0 = arith.constant 0 : i32
    %c0_i32_1 = arith.constant 0 : i32
    return %arg0, %c0_i32, %c0_i32_0 : i32, i32, i32
  }
  func.func @transform_1(%arg0: i32) -> (i32, i32, i32) {
    %c0_i32 = arith.constant 0 : i32
    %c0_i32_0 = arith.constant 0 : i32
    %c0_i32_1 = arith.constant 0 : i32
    return %arg0, %c0_i32, %c0_i32_0 : i32, i32, i32
  }
  func.func @transform_2(%arg0: i32) -> (i32, i32, i32) {
    %c0_i32 = arith.constant 0 : i32
    %c0_i32_0 = arith.constant 0 : i32
    %c0_i32_1 = arith.constant 0 : i32
    return %arg0, %c0_i32, %c0_i32_0 : i32, i32, i32
  }
  func.func @transform_3(%arg0: i32) -> (i32, i32, i32, i32) {
    %c0_i32 = arith.constant 0 : i32
    %c0_i32_0 = arith.constant 0 : i32
    %c0_i32_1 = arith.constant 0 : i32
    %c0_i32_2 = arith.constant 0 : i32
    return %arg0, %c0_i32, %c0_i32_0, %c0_i32_1 : i32, i32, i32, i32
  }
  func.func @transform_4(%arg0: i32) -> (i32, i32, i32) {
    %c0_i32 = arith.constant 0 : i32
    %c0_i32_0 = arith.constant 0 : i32
    %c0_i32_1 = arith.constant 0 : i32
    return %arg0, %c0_i32, %c0_i32_0 : i32, i32, i32
  }
}

module attributes {stable_mosaic.version = 11 : i64} {
  func.func @_linear_kernel(%arg0: i32, %arg1: i32, %arg2: i32, %arg3: memref<16x128xbf16, #tpu.memory_space<vmem>>, %arg4: memref<128x128xbf16, #tpu.memory_space<vmem>>, %arg5: memref<1x128xf32, #tpu.memory_space<vmem>>, %arg6: memref<16x128xbf16, #tpu.memory_space<vmem>>, %arg7: memref<16x128xf32, #tpu.memory_space<vmem>>) attributes {dimension_semantics = [#tpu.dimension_semantics<parallel>, #tpu.dimension_semantics<parallel>, #tpu.dimension_semantics<arbitrary>], iteration_bounds = array<i64: 1, 1, 1>, scalar_prefetch = 0 : i64, scratch_operands = 1 : i64, tpu.core_type = #tpu.core_type<tc>, window_params = [{transform_indices = @transform_0, window_bounds = array<i64: 16, 128>}, {transform_indices = @transform_1, window_bounds = array<i64: 128, 128>}, {transform_indices = @transform_2, window_bounds = array<i64: 1, 128>}, {transform_indices = @transform_3, window_bounds = array<i64: 16, 128>}]} {
    %c0_i32 = arith.constant 0 : i32
    %0 = arith.cmpi eq, %arg2, %c0_i32 : i32
    %1 = arith.extui %0 : i1 to i32
    %c0_i32_0 = arith.constant 0 : i32
    %2 = arith.cmpi ne, %1, %c0_i32_0 : i32
    scf.if %2 {
      %cst_10 = arith.constant 0.000000e+00 : f32
      %12 = vector.broadcast %cst_10 : f32 to vector<16x128xf32>
      %c0_11 = arith.constant 0 : index
      %c0_12 = arith.constant 0 : index
      %13 = vector.load %arg7[%c0_11, %c0_12] : memref<16x128xf32, #tpu.memory_space<vmem>>, vector<16x128xf32>
      tpu.vector_store %arg7[%c0_11, %c0_12], %12 {strides = array<i32>} : memref<16x128xf32, #tpu.memory_space<vmem>>, vector<16x128xf32>,
    } else {
    }
    %c0 = arith.constant 0 : index
    %c0_1 = arith.constant 0 : index
    %3 = vector.load %arg7[%c0, %c0_1] : memref<16x128xf32, #tpu.memory_space<vmem>>, vector<16x128xf32>
    %c0_2 = arith.constant 0 : index
    %c0_3 = arith.constant 0 : index
    %4 = vector.load %arg3[%c0_2, %c0_3] : memref<16x128xbf16, #tpu.memory_space<vmem>>, vector<16x128xbf16>
    %c0_4 = arith.constant 0 : index
    %c0_5 = arith.constant 0 : index
    %5 = vector.load %arg4[%c0_4, %c0_5] : memref<128x128xbf16, #tpu.memory_space<vmem>>, vector<128x128xbf16>
    %cst = arith.constant dense<0.000000e+00> : vector<16x128xf32>
    %6 = tpu.matmul %4, %5, %cst {dimension_numbers = #tpu.dot_dimension_numbers<[1], [0], [0], [1], [0, 0, 1, 1], [], []>} : vector<16x128xbf16>, vector<128x128xbf16>, vector<16x128xf32> -> vector<16x128xf32>
    %7 = arith.addf %3, %6 : vector<16x128xf32>
    %c0_6 = arith.constant 0 : index
    %c0_7 = arith.constant 0 : index
    %8 = vector.load %arg7[%c0_6, %c0_7] : memref<16x128xf32, #tpu.memory_space<vmem>>, vector<16x128xf32>
    tpu.vector_store %arg7[%c0_6, %c0_7], %7 {strides = array<i32>} : memref<16x128xf32, #tpu.memory_space<vmem>>, vector<16x128xf32>,
    %c0_i32_8 = arith.constant 0 : i32
    %9 = arith.cmpi eq, %arg2, %c0_i32_8 : i32
    %10 = arith.extui %9 : i1 to i32
    %c0_i32_9 = arith.constant 0 : i32
    %11 = arith.cmpi ne, %10, %c0_i32_9 : i32
    scf.if %11 {
      %c0_10 = arith.constant 0 : index
      %c0_11 = arith.constant 0 : index
      %12 = vector.load %arg7[%c0_10, %c0_11] : memref<16x128xf32, #tpu.memory_space<vmem>>, vector<16x128xf32>
      %c0_12 = arith.constant 0 : index
      %c0_13 = arith.constant 0 : index
      %13 = vector.load %arg5[%c0_12, %c0_13] : memref<1x128xf32, #tpu.memory_space<vmem>>, vector<1x128xf32>
      %14 = vector.broadcast %13 : vector<1x128xf32> to vector<16x128xf32>
      %15 = arith.addf %12, %14 : vector<16x128xf32>
      %cst_14 = arith.constant 0.000000e+00 : f32
      %16 = vector.broadcast %cst_14 : f32 to vector<16x128xf32>
      %17 = arith.maximumf %15, %16 : vector<16x128xf32>
      %18 = arith.truncf %17 : vector<16x128xf32> to vector<16x128xbf16>
      %c0_15 = arith.constant 0 : index
      %c0_16 = arith.constant 0 : index
      %19 = vector.load %arg6[%c0_15, %c0_16] : memref<16x128xbf16, #tpu.memory_space<vmem>>, vector<16x128xbf16>
      tpu.vector_store %arg6[%c0_15, %c0_16], %18 {strides = array<i32>} : memref<16x128xbf16, #tpu.memory_space<vmem>>, vector<16x128xbf16>,
    } else {
    }
    return
  }
  func.func @transform_0(%arg0: i32, %arg1: i32, %arg2: i32) -> (i32, i32) {
    %c0_i32 = arith.constant 0 : i32
    return %arg0, %arg2 : i32, i32
  }
  func.func @transform_1(%arg0: i32, %arg1: i32, %arg2: i32) -> (i32, i32) {
    %c0_i32 = arith.constant 0 : i32
    return %arg2, %arg1 : i32, i32
  }
  func.func @transform_2(%arg0: i32, %arg1: i32, %arg2: i32) -> (i32, i32) {
    %c0_i32 = arith.constant 0 : i32
    %c0_i32_0 = arith.constant 0 : i32
    return %c0_i32, %arg1 : i32, i32
  }
  func.func @transform_3(%arg0: i32, %arg1: i32, %arg2: i32) -> (i32, i32) {
    %c0_i32 = arith.constant 0 : i32
    return %arg0, %arg1 : i32, i32
  }
}

module attributes {stable_mosaic.version = 11 : i64} {
  func.func @_linear_kernel(%arg0: i32, %arg1: i32, %arg2: i32, %arg3: memref<16x128xbf16, #tpu.memory_space<vmem>>, %arg4: memref<128x128xbf16, #tpu.memory_space<vmem>>, %arg5: memref<1x128xf32, #tpu.memory_space<vmem>>, %arg6: memref<16x128xf32, #tpu.memory_space<vmem>>, %arg7: memref<16x128xf32, #tpu.memory_space<vmem>>) attributes {dimension_semantics = [#tpu.dimension_semantics<parallel>, #tpu.dimension_semantics<parallel>, #tpu.dimension_semantics<arbitrary>], iteration_bounds = array<i64: 1, 1, 1>, scalar_prefetch = 0 : i64, scratch_operands = 1 : i64, tpu.core_type = #tpu.core_type<tc>, window_params = [{transform_indices = @transform_0, window_bounds = array<i64: 16, 128>}, {transform_indices = @transform_1, window_bounds = array<i64: 128, 128>}, {transform_indices = @transform_2, window_bounds = array<i64: 1, 128>}, {transform_indices = @transform_3, window_bounds = array<i64: 16, 128>}]} {
    %c0_i32 = arith.constant 0 : i32
    %0 = arith.cmpi eq, %arg2, %c0_i32 : i32
    %1 = arith.extui %0 : i1 to i32
    %c0_i32_0 = arith.constant 0 : i32
    %2 = arith.cmpi ne, %1, %c0_i32_0 : i32
    scf.if %2 {
      %cst_10 = arith.constant 0.000000e+00 : f32
      %12 = vector.broadcast %cst_10 : f32 to vector<16x128xf32>
      %c0_11 = arith.constant 0 : index
      %c0_12 = arith.constant 0 : index
      %13 = vector.load %arg7[%c0_11, %c0_12] : memref<16x128xf32, #tpu.memory_space<vmem>>, vector<16x128xf32>
      tpu.vector_store %arg7[%c0_11, %c0_12], %12 {strides = array<i32>} : memref<16x128xf32, #tpu.memory_space<vmem>>, vector<16x128xf32>,
    } else {
    }
    %c0 = arith.constant 0 : index
    %c0_1 = arith.constant 0 : index
    %3 = vector.load %arg7[%c0, %c0_1] : memref<16x128xf32, #tpu.memory_space<vmem>>, vector<16x128xf32>
    %c0_2 = arith.constant 0 : index
    %c0_3 = arith.constant 0 : index
    %4 = vector.load %arg3[%c0_2, %c0_3] : memref<16x128xbf16, #tpu.memory_space<vmem>>, vector<16x128xbf16>
    %c0_4 = arith.constant 0 : index
    %c0_5 = arith.constant 0 : index
    %5 = vector.load %arg4[%c0_4, %c0_5] : memref<128x128xbf16, #tpu.memory_space<vmem>>, vector<128x128xbf16>
    %cst = arith.constant dense<0.000000e+00> : vector<16x128xf32>
    %6 = tpu.matmul %4, %5, %cst {dimension_numbers = #tpu.dot_dimension_numbers<[1], [0], [0], [1], [0, 0, 1, 1], [], []>} : vector<16x128xbf16>, vector<128x128xbf16>, vector<16x128xf32> -> vector<16x128xf32>
    %7 = arith.addf %3, %6 : vector<16x128xf32>
    %c0_6 = arith.constant 0 : index
    %c0_7 = arith.constant 0 : index
    %8 = vector.load %arg7[%c0_6, %c0_7] : memref<16x128xf32, #tpu.memory_space<vmem>>, vector<16x128xf32>
    tpu.vector_store %arg7[%c0_6, %c0_7], %7 {strides = array<i32>} : memref<16x128xf32, #tpu.memory_space<vmem>>, vector<16x128xf32>,
    %c0_i32_8 = arith.constant 0 : i32
    %9 = arith.cmpi eq, %arg2, %c0_i32_8 : i32
    %10 = arith.extui %9 : i1 to i32
    %c0_i32_9 = arith.constant 0 : i32
    %11 = arith.cmpi ne, %10, %c0_i32_9 : i32
    scf.if %11 {
      %c0_10 = arith.constant 0 : index
      %c0_11 = arith.constant 0 : index
      %12 = vector.load %arg7[%c0_10, %c0_11] : memref<16x128xf32, #tpu.memory_space<vmem>>, vector<16x128xf32>
      %c0_12 = arith.constant 0 : index
      %c0_13 = arith.constant 0 : index
      %13 = vector.load %arg5[%c0_12, %c0_13] : memref<1x128xf32, #tpu.memory_space<vmem>>, vector<1x128xf32>
      %14 = vector.broadcast %13 : vector<1x128xf32> to vector<16x128xf32>
      %15 = arith.addf %12, %14 : vector<16x128xf32>
      %c0_14 = arith.constant 0 : index
      %c0_15 = arith.constant 0 : index
      %16 = vector.load %arg6[%c0_14, %c0_15] : memref<16x128xf32, #tpu.memory_space<vmem>>, vector<16x128xf32>
      tpu.vector_store %arg6[%c0_14, %c0_15], %15 {strides = array<i32>} : memref<16x128xf32, #tpu.memory_space<vmem>>, vector<16x128xf32>,
    } else {
    }
    return
  }
  func.func @transform_0(%arg0: i32, %arg1: i32, %arg2: i32) -> (i32, i32) {
    %c0_i32 = arith.constant 0 : i32
    return %arg0, %arg2 : i32, i32
  }
  func.func @transform_1(%arg0: i32, %arg1: i32, %arg2: i32) -> (i32, i32) {
    %c0_i32 = arith.constant 0 : i32
    return %arg2, %arg1 : i32, i32
  }
  func.func @transform_2(%arg0: i32, %arg1: i32, %arg2: i32) -> (i32, i32) {
    %c0_i32 = arith.constant 0 : i32
    %c0_i32_0 = arith.constant 0 : i32
    return %c0_i32, %arg1 : i32, i32
  }
  func.func @transform_3(%arg0: i32, %arg1: i32, %arg2: i32) -> (i32, i32) {
    %c0_i32 = arith.constant 0 : i32
    return %arg0, %arg1 : i32, i32
  }
}

</mosaic_0001>

<bundles_post_ra>
// kernel: decoder_forward.28
= control target key start
LH: loop header
LB: loop body
LE: loop exit
PB: predicated region body
PF: predicated region fallthrough
CT: control target
= control target key end

     0   :  { %vm27_vm0 = vcmask 261120   ;;  %vm81_vm1 = vcmask 257024   ;;  %s153_s0 = inlined_call_operand.vmem [shape: bf16[16,32], index: 0, kind: input, shape index: {}]   ;;  %s154_s1 = inlined_call_operand.vmem [shape: bf16[16,32], index: 1, kind: input, shape index: {}]   ;;  %s155_s2 = inlined_call_operand.vmem [shape: f32[1,32], index: 2, kind: input, shape index: {}]   ;;  %s156_s3 = inlined_call_operand.vmem [shape: f32[1,32], index: 3, kind: input, shape index: {}]   ;;  %s157_s4 = inlined_call_operand.vmem [shape: bf16[16,32], index: 4, kind: output, shape index: {}]  }
   0x1   :  { %v95_v0 = vld [vmem:[%s153_s0] sm:$0xff]  }
   0x2   :  { %v99_v1 = vld [vmem:[%s154_s1] sm:$0xff]   ;;  %v96_v2 = vunpack.c.l.bf16 %v95_v0  ;;  %v97_v4 = vunpack.c.h.bf16 %v95_v0 }
   0x3   :  { %v100_v3 = vunpack.c.l.bf16 %v99_v1  ;;  %v101_v5 = vunpack.c.h.bf16 %v99_v1  ;;  %v88_v27 = vld [vmem:[%s155_s2] ss:$0 sm:$0xff] }
   0x4   :  { %v89_v29 = vld [vmem:[%s156_s3] ss:$0 sm:$0xff] }
   0x5   :  { %v25_v6 = vadd.f32 %v100_v3, %v96_v2  ;;  %v26_v7 = vadd.f32 %v101_v5, %v97_v4 }
   0x7   :  { %v28_v8 = vsel %vm27_vm0, %v25_v6, 0.0  ;;  %v31_v9 = vsel %vm27_vm0, %v26_v7, 0.0 }
   0x8   :  { %29 = vadd.xlane.f32.xlu0 %v28_v8 }
   0xc   :  { %32 = vadd.xlane.f32.xlu0 %v31_v9 }
  0x95   :  { %v30_v10 = vpop.xlane.xlu0 %29 }
  0x96   :  { %v35_v11 = vmul.f32 0.03125, %v30_v10 }
  0x98   :  { %v37_v12 = vsub.f32 %v25_v6, %v35_v11 }
  0x99   :  { %v33_v13 = vpop.xlane.xlu0 %32 }
  0x9a   :  { %v36_v14 = vmul.f32 0.03125, %v33_v13  ;;  %v39_v15 = vmul.f32 %v37_v12, %v37_v12 }
  0x9c   :  { %v38_v16 = vsub.f32 %v26_v7, %v36_v14  ;;  %v41_v17 = vsel %vm27_vm0, %v39_v15, 0.0 }
  0x9d   :  { %42 = vadd.xlane.f32.xlu1 %v41_v17 }
  0x9e   :  { %v40_v18 = vmul.f32 %v38_v16, %v38_v16 }
  0xa0   :  { %v44_v19 = vsel %vm27_vm0, %v40_v18, 0.0 }
  0xa1   :  { %45 = vadd.xlane.f32.xlu1 %v44_v19 }
 0x12a   :  { %v43_v20 = vpop.xlane.xlu1 %42 }
 0x12b   :  { %v47_v21 = vmul.f32 0.03125, %v43_v20 }
 0x12d   :  { %v49_v22 = vadd.f32 1e-05, %v47_v21 }
 0x12e   :  { %v46_v23 = vpop.xlane.xlu1 %45 }
 0x12f   :  { %102 = vrsqrt.f32 %v49_v22  ;;  %v48_v24 = vmul.f32 0.03125, %v46_v23 }
 0x131   :  { %v50_v25 = vadd.f32 1e-05, %v48_v24 }
 0x133   :  { %104 = vrsqrt.f32 %v50_v25 }
 0x139   :  { %v103_v26 = vpop.eup %102 }
 0x13a   :  { %v53_v28 = vmul.f32 %v103_v26, %v37_v12 }
 0x13c   :  { %v62_v30 = vmul.f32 %v88_v27, %v53_v28 }
 0x13d   :  { %v105_v31 = vpop.eup %104 }
 0x13e   :  { %v71_v32 = vadd.f32 %v89_v29, %v62_v30  ;;  %v54_v33 = vmul.f32 %v105_v31, %v38_v16 }
 0x140   :  { %v92_v34 = vpack.c.bf16 %v71_v32, %v71_v32  ;;  %v63_v35 = vmul.f32 %v88_v27, %v54_v33 }
 0x142   :  { %82 = vst.msk [vmem:[%s157_s4] sm:$0xf] %vm81_vm1, %v92_v34  ;;  %v72_v36 = vadd.f32 %v89_v29, %v63_v35 }
 0x144   :  { %v93_v37 = vpack.c.bf16 %v72_v36, %v72_v36 }
 0x146   :  { %83 = vst.msk [vmem:[%s157_s4 + $0x4] sm:$0xf] %vm81_vm1, %v93_v37 }

// kernel: decoder_forward.25
= control target key start
LH: loop header
LB: loop body
LE: loop exit
PB: predicated region body
PF: predicated region fallthrough
CT: control target
= control target key end

     0   :  { %v227_v0 = vmov 0.0   ;;  %vm228_vm0 = vmmov 0   ;;  %s282_s1 = inlined_call_operand.vmem [shape: bf16[128,128], index: 1, kind: input, shape index: {}]   ;;  %s283_s0 = inlined_call_operand.vmem [shape: bf16[16,128], index: 0, kind: input, shape index: {}]   ;;  %s284_s2 = inlined_call_operand.vmem [shape: f32[1,128], index: 2, kind: input, shape index: {}]   ;;  %s285_s3 = inlined_call_operand.vmem [shape: bf16[16,128], index: 3, kind: output, shape index: {}]  }
   0x1   :  { %196 = vmatprep.subr.bf16.mxu0 %v227_v0  ;;  %v218_v1 = vld [vmem:[%s282_s1] sm:$0xff]   ;;  %212 = vmatprep.mubr.msk.bf16.mxu0 %vm228_vm0, %v227_v0  ;;  %v219_v2 = vld [vmem:[%s282_s1 + $0x8] sm:$0xff]   ;;  %v220_v3 = vld [vmem:[%s282_s1 + $0x10] sm:$0xff]  }
   0x2   :  { %197 = vmatpush3.bf16.msra.mxu0 %v218_v1  ;;  %v221_v4 = vld [vmem:[%s282_s1 + $0x18] sm:$0xff]   ;;  %v222_v5 = vld [vmem:[%s282_s1 + $0x20] sm:$0xff]   ;;  %v223_v6 = vld [vmem:[%s282_s1 + $0x28] sm:$0xff]  }
   0x3   :  { %198 = vmatprep.subr.bf16.mxu0 %v227_v0  ;;  %v224_v7 = vld [vmem:[%s282_s1 + $0x30] sm:$0xff]   ;;  %v225_v8 = vld [vmem:[%s282_s1 + $0x38] sm:$0xff]   ;;  %v226_v9 = vld [vmem:[%s283_s0] sm:$0xff]  }
   0x4   :  { %v177_v11 = vld [vmem:[%s284_s2] ss:$0 sm:$0xff] }
   0x6   :  { %199 = vmatpush3.bf16.msra.mxu0 %v219_v2 }
   0x7   :  { %200 = vmatprep.subr.bf16.mxu0 %v227_v0 }
   0xa   :  { %201 = vmatpush3.bf16.msra.mxu0 %v220_v3 }
   0xb   :  { %202 = vmatprep.subr.bf16.mxu0 %v227_v0 }
   0xe   :  { %203 = vmatpush3.bf16.msra.mxu0 %v221_v4 }
   0xf   :  { %204 = vmatprep.subr.bf16.mxu0 %v227_v0 }
  0x12   :  { %205 = vmatpush3.bf16.msra.mxu0 %v222_v5 }
  0x13   :  { %206 = vmatprep.subr.bf16.mxu0 %v227_v0 }
  0x16   :  { %207 = vmatpush3.bf16.msra.mxu0 %v223_v6 }
  0x17   :  { %208 = vmatprep.subr.bf16.mxu0 %v227_v0 }
  0x1a   :  { %209 = vmatpush3.bf16.msra.mxu0 %v224_v7 }
  0x1b   :  { %210 = vmatprep.subr.bf16.mxu0 %v227_v0 }
  0x1e   :  { %211 = vmatpush3.bf16.msra.mxu0 %v225_v8 }
  0x21   :  { %213 = vmatmul.mubr.bf16.vlgmr.msra.gmra.mrb[0].mxu0 %v226_v9 }
  0xf4   :  { %v129_v10 = vpop.f32.mrb[0].mxu0 }
  0xf5   :  { %v214_v12 = vpop.f32.mrb[1].mxu0  ;;  %v152_v14 = vadd.f32 %v177_v11, %v129_v10 }
  0xf6   :  { %v132_v13 = vpop.f32.mrb[2].mxu0 }
  0xf7   :  { %v153_v15 = vadd.f32 %v177_v11, %v132_v13  ;;  %v215_v16 = vpop.f32.mrb[3].mxu0 }
  0xf9   :  { %v185_v17 = vpack.c.bf16 %v153_v15, %v152_v14 }
  0xfb   :  { %186 = vst [vmem:[%s285_s3] sm:$0xff] %v185_v17  }

// kernel: decoder_forward.26
= control target key start
LH: loop header
LB: loop body
LE: loop exit
PB: predicated region body
PF: predicated region fallthrough
CT: control target
= control target key end

     0   :  { %s1113_s15 = smov 0   ;;  %s1244_s0 = inlined_call_operand.vmem [shape: bf16[2,16,32], index: 0, kind: input, shape index: {}]   ;;  %s1245_s1 = inlined_call_operand.vmem [shape: bf16[2,16,32], index: 1, kind: input, shape index: {}]   ;;  %s1246_s2 = inlined_call_operand.vmem [shape: bf16[2,16,32], index: 2, kind: input, shape index: {}]   ;;  %s1247_s3 = inlined_call_operand.vmem [shape: f32[2,1,16,16], index: 3, kind: input, shape index: {}]   ;;  %s1248_s4 = inlined_call_operand.vmem [shape: bf16[2,16,32], index: 4, kind: output, shape index: {}]  }
   0x1 LB: > { %s905_s16 = sadd.s32 4294967295, %s1078_s15   ;;  %p909_p0 = scmp.ge.s32.totalorder %s1078_s15, 1  ;;  %s1078_s15 = sphi %s1113_s15, %s14_s15  }
   0x2   : > { %p192_p1 = scmp.lt.s32.totalorder %s1078_s15, 3 }
   0x4   : > { %p193_p2 = pnand %p909_p0, %p192_p1 }
   0x5   : > { %p233_p3 = scmp.lt.s32.totalorder (!%p193_p2), %s905_s16, 1  ;;  %v1080_v0 = vmov (!%p193_p2), 0.0   ;;  %vm1081_vm0 = vmmov (!%p193_p2), 0   ;;  %vm277_vm1 = vcmask (!%p193_p2), 64512   ;;  %vm329_vm3 = vcmask (!%p193_p2), 130048   ;;  %s1082_s28 = smov (!%p193_p2), 120  }
   0x6   : > { %196 = sbr.rel (%p193_p2) target bundleno = 1497 (0x5d9), region = 36  ;;  %958 = vmatprep.subr.bf16.mxu0 (!%p193_p2), %v1080_v0  ;;  %960 = vmatprep.mubr.msk.bf16.mxu0 (!%p193_p2), %vm1081_vm0, %v1080_v0  ;;  %s1083_s29 = smov (!%p193_p2), 104   ;;  %vm800_vm5 = vcmask (!%p193_p2), 195584   ;;  %vm811_vm6 = vcmask (!%p193_p2), 257024  }
   0x7   : > { %964 = vmatprep.subr.bf16.mxu1 (!%p193_p2), %v1080_v0  ;;  %966 = vmatprep.mubr.msk.bf16.mxu1 (!%p193_p2), %vm1081_vm0, %v1080_v0  ;;  %s1084_s7 = smov (!%p193_p2), 112   ;;  %s1085_s8 = smov (!%p193_p2), 8  }
   0x8   : > { %s1086_s9 = smov (!%p193_p2), 16   ;;  %s1087_s10 = smov (!%p193_p2), 24  }
   0xd   : > { %s1250_s16 = smov (!%p233_p3, %s905_s16), 1 }
   0xe   : > { %s1127_s17 = sshll.u32 %s1250_s16, 3  ;;  %s938_s24 = sshll.u32 %s1250_s16, 4 }
   0xf   : > { %s242_s20 = scalar_lea.vmem %s1245_s1, %s1127_s17  ;;  %s237_s23 = scalar_lea.vmem %s1244_s0, %s1127_s17 }
  0x10   : > { %v1037_v1 = vld [vmem:[%s242_s20] sm:$0xff]   ;;  %s252_s27 = scalar_lea.vmem %s1247_s3, %s938_s24  ;;  %s247_s6 = scalar_lea.vmem %s1246_s2, %s1127_s17 }
  0x11   : > { %v282_v2 = vsel %vm277_vm1, %v1037_v1, 0  ;;  %v1038_v3 = vld [vmem:[%s237_s23] sm:$0xff]   ;;  %v1147_v5 = vld [vmem:[%s252_s27 + $0x8] sm:$0xff]  ;;  %s257_s13 = scalar_lea.vmem %s1248_s4, %s1127_s17 }
  0x12   : > { %959 = vmatpush3.bf16.xpose.msra.mxu0 %v282_v2  ;;  %v1145_v4 = vld [vmem:[%s252_s27] sm:$0xff]  ;;  %vm326_vm4 = vcmp.ne.f32.partialorder %v1147_v5, 0.0 }
  0x13   : > { %976 = vmatprep.subr.bf16.mxu0 %v1080_v0  ;;  %vm325_vm2 = vcmp.ne.f32.partialorder %v1145_v4, 0.0  ;;  %v1165_v24 = vld [vmem:[%s247_s6] sm:$0xff]  }
  0x14   : > { %965 = vmatpush3.bf16.msra.mxu1 %v1165_v24 }
  0x15   : > { %970 = vmatprep.subr.bf16.mxu1 %v1080_v0 }
  0x19   : > { %961 = vmatmul.mubr.msk.bf16.vlgmr.msra.gmra.mrb[0].mxu0 %vm277_vm1, %v1038_v3 }
  0x1a   : > { %978 = vmatprep.mubr.msk.bf16.mxu0 %vm1081_vm0, %v1080_v0 }
  0xec   : > { %v318_v6 = vpop.f32.mrb[0].mxu0 }
  0xed   : > { %v327_v7 = vsel %vm325_vm2, %v318_v6, -1e+30  ;;  %v962_v8 = vpop.f32.mrb[1].mxu0 }
  0xee   : > { %v321_v9 = vpop.f32.mrb[2].mxu0  ;;  %v330_v10 = vsel %vm329_vm3, %v327_v7, -inf }
  0xef   : > { %v328_v11 = vsel %vm326_vm4, %v321_v9, -1e+30  ;;  %331 = vmax.xlane.f32.xlu0 %v330_v10  ;;  %v963_v12 = vpop.f32.mrb[3].mxu0 }
  0xf0   : > { %v333_v13 = vsel %vm329_vm3, %v328_v11, -inf }
  0xf3   : > { %334 = vmax.xlane.f32.xlu0 %v333_v13 }
 0x109   : > { %405 = vrot.lane.b32.xlu0 %v1037_v1, %s1082_s28 }
 0x10d   : > { %651 = vrot.lane.b32.xlu0 %v1037_v1, %s1083_s29 }
 0x17c   : > { %v332_v14 = vpop.xlane.xlu0 %331 }
 0x17d   : > { %v336_v15 = vsub.f32 %v327_v7, %v332_v14 }
 0x17f   : > { %v338_v16 = vmul.f32 1.442695, %v336_v15 }
 0x180   : > { %v335_v17 = vpop.xlane.xlu0 %334 }
 0x181   : > { %1040 = vpow2.f32 %v338_v16  ;;  %v337_v18 = vsub.f32 %v328_v11, %v335_v17 }
 0x183   : > { %v340_v19 = vmul.f32 1.442695, %v337_v18 }
 0x184   : > { %v406_v29 = vpop.permute.xlu0 %405 }
 0x185   : > { %1042 = vpow2.f32 %v340_v19  ;;  %v411_v33 = vsel %vm277_vm1, %v406_v29, 0 }
 0x188   : > { %v652_v37 = vpop.permute.xlu0 %651 }
 0x189   : > { %v657_v39 = vsel %vm277_vm1, %v652_v37, 0 }
 0x18b   : > { %v1041_v20 = vpop.eup %1040 }
 0x18c   : > { %v342_v21 = vsel %vm329_vm3, %v1041_v20, 0.0 }
 0x18d   : > { %343 = vadd.xlane.f32.xlu1 %v342_v21 }
 0x18f   : > { %v1043_v22 = vpop.eup %1042 }
 0x190   : > { %v345_v23 = vsel %vm329_vm3, %v1043_v22, 0.0 }
 0x191   : > { %346 = vadd.xlane.f32.xlu1 %v345_v23 }
 0x1a2   : > { %403 = vrot.lane.b32.xlu1 %v1038_v3, %s1082_s28 }
 0x1a6   : > { %528 = vrot.lane.b32.xlu1 %v1037_v1, %s1084_s7 }
 0x1aa   : > { %526 = vrot.lane.b32.xlu1 %v1038_v3, %s1084_s7 }
 0x1ae   : > { %649 = vrot.lane.b32.xlu1 %v1038_v3, %s1083_s29 }
 0x21a   : > { %v344_v25 = vpop.xlane.xlu1 %343 }
 0x21b   : > { %1044 = vrcp.f32 %v344_v25 }
 0x21e   : > { %v347_v26 = vpop.xlane.xlu1 %346 }
 0x21f   : > { %1046 = vrcp.f32 %v347_v26 }
 0x222   : > { %v404_v32 = vpop.permute.xlu1 %403 }
 0x225   : > { %v1045_v27 = vpop.eup %1044 }
 0x226   : > { %v350_v30 = vmul.f32 %v1045_v27, %v1041_v20  ;;  %v529_v35 = vpop.permute.xlu1 %528 }
 0x227   : > { %v534_v36 = vsel %vm277_vm1, %v529_v35, 0 }
 0x229   : > { %v1047_v28 = vpop.eup %1046 }
 0x22a   : > { %v351_v31 = vmul.f32 %v1047_v28, %v1043_v22  ;;  %v527_v38 = vpop.permute.xlu1 %526 }
 0x22c   : > { %v352_v34 = vpack.c.bf16 %v351_v31, %v350_v30 }
 0x22e   : > { %967 = vmatmul.mubr.msk.bf16.vlgmr.msra.gmra.mrb[0].mxu1 %vm329_vm3, %v352_v34  ;;  %v650_v40 = vpop.permute.xlu1 %649 }
 0x22f   : > { %971 = vmatpush3.bf16.xpose.msra.mxu1 %v411_v33  ;;  %972 = vmatprep.mubr.msk.bf16.mxu1 %vm1081_vm0, %v1080_v0 }
 0x230   : > { %982 = vmatprep.subr.bf16.mxu1 %v1080_v0 }
 0x236   : > { %973 = vmatmul.mubr.msk.bf16.vlgmr.msra.gmra.mrb[4].mxu1 %vm277_vm1, %v404_v32 }
 0x237   : > { %983 = vmatpush3.bf16.xpose.msra.mxu1 %v534_v36  ;;  %984 = vmatprep.mubr.msk.bf16.mxu1 %vm1081_vm0, %v1080_v0 }
 0x238   : > { %994 = vmatprep.subr.bf16.mxu1 %v1080_v0 }
 0x23e   : > { %985 = vmatmul.mubr.msk.bf16.vlgmr.msra.gmra.mrb[8].mxu1 %vm277_vm1, %v527_v38 }
 0x23f   : > { %995 = vmatpush3.bf16.xpose.msra.mxu1 %v657_v39  ;;  %996 = vmatprep.mubr.msk.bf16.mxu1 %vm1081_vm0, %v1080_v0 }
 0x246   : > { %997 = vmatmul.mubr.msk.bf16.vlgmr.msra.gmra.mrb[12].mxu1 %vm277_vm1, %v650_v40 }
 0x301   : > { %v1188_v41 = vpop.f32.mrb[0].mxu1 }
 0x302   : > { %v968_v42 = vpop.f32.mrb[1].mxu1 }
 0x303   : > { %v1190_v43 = vpop.f32.mrb[2].mxu1 }
 0x304   : > { %v969_v44 = vpop.f32.mrb[3].mxu1 }
 0x309   : > { %v447_v45 = vpop.f32.mrb[4].mxu1 }
 0x30a   : > { %v454_v46 = vsel %vm325_vm2, %v447_v45, -1e+30  ;;  %v974_v47 = vpop.f32.mrb[5].mxu1 }
 0x30b   : > { %v450_v48 = vpop.f32.mrb[6].mxu1  ;;  %v456_v49 = vsel %vm329_vm3, %v454_v46, -inf }
 0x30c   : > { %v455_v50 = vsel %vm326_vm4, %v450_v48, -1e+30  ;;  %457 = vmax.xlane.f32.xlu0 %v456_v49  ;;  %v975_v51 = vpop.f32.mrb[7].mxu1 }
 0x30d   : > { %v459_v52 = vsel %vm329_vm3, %v455_v50, -inf }
 0x30e   : > { %460 = vmax.xlane.f32.xlu1 %v459_v52 }
 0x311   : > { %v570_v53 = vpop.f32.mrb[8].mxu1 }
 0x312   : > { %v577_v54 = vsel %vm325_vm2, %v570_v53, -1e+30  ;;  %v986_v55 = vpop.f32.mrb[9].mxu1 }
 0x313   : > { %v573_v56 = vpop.f32.mrb[10].mxu1  ;;  %v579_v57 = vsel %vm329_vm3, %v577_v54, -inf }
 0x314   : > { %v578_v58 = vsel %vm326_vm4, %v573_v56, -1e+30  ;;  %580 = vmax.xlane.f32.xlu0 %v579_v57  ;;  %v987_v59 = vpop.f32.mrb[11].mxu1 }
 0x315   : > { %v582_v60 = vsel %vm329_vm3, %v578_v58, -inf }
 0x318   : > { %583 = vmax.xlane.f32.xlu0 %v582_v60 }
 0x319   : > { %v693_v61 = vpop.f32.mrb[12].mxu1 }
 0x31a   : > { %v700_v62 = vsel %vm325_vm2, %v693_v61, -1e+30  ;;  %v998_v63 = vpop.f32.mrb[13].mxu1 }
 0x31b   : > { %v696_v1 = vpop.f32.mrb[14].mxu1  ;;  %v702_v2 = vsel %vm329_vm3, %v700_v62, -inf }
 0x31c   : > { %v701_v3 = vsel %vm326_vm4, %v696_v1, -1e+30  ;;  %703 = vmax.xlane.f32.xlu0 %v702_v2  ;;  %v999_v6 = vpop.f32.mrb[15].mxu1 }
 0x31d   : > { %v705_v7 = vsel %vm329_vm3, %v701_v3, -inf }
 0x31e   : > { %706 = vmax.xlane.f32.xlu1 %v705_v7 }
 0x399   : > { %v458_v8 = vpop.xlane.xlu0 %457 }
 0x39a   : > { %v462_v9 = vsub.f32 %v454_v46, %v458_v8 }
 0x39b   : > { %v461_v10 = vpop.xlane.xlu1 %460 }
 0x39c   : > { %v464_v11 = vmul.f32 1.442695, %v462_v9  ;;  %v463_v12 = vsub.f32 %v455_v50, %v461_v10 }
 0x39e   : > { %1048 = vpow2.f32 %v464_v11  ;;  %v466_v4 = vmul.f32 1.442695, %v463_v12 }
 0x3a0   : > { %1050 = vpow2.f32 %v466_v4 }
 0x3a1   : > { %v581_v13 = vpop.xlane.xlu0 %580 }
 0x3a2   : > { %v585_v14 = vsub.f32 %v577_v54, %v581_v13 }
 0x3a4   : > { %v587_v15 = vmul.f32 1.442695, %v585_v14 }
 0x3a5   : > { %v584_v16 = vpop.xlane.xlu0 %583 }
 0x3a6   : > { %1052 = vpow2.f32 %v587_v15  ;;  %v586_v5 = vsub.f32 %v578_v58, %v584_v16 }
 0x3a8   : > { %v1049_v17 = vpop.eup %1048  ;;  %v589_v18 = vmul.f32 1.442695, %v586_v5 }
 0x3a9   : > { %v704_v19 = vpop.xlane.xlu0 %703  ;;  %v468_v20 = vsel %vm329_vm3, %v1049_v17, 0.0 }
 0x3aa   : > { %v1051_v21 = vpop.eup %1050  ;;  %1054 = vpow2.f32 %v589_v18  ;;  %v708_v22 = vsub.f32 %v700_v62, %v704_v19  ;;  %469 = vadd.xlane.f32.xlu0 %v468_v20 }
 0x3ab   : > { %v471_v23 = vsel %vm329_vm3, %v1051_v21, 0.0  ;;  %v707_v32 = vpop.xlane.xlu1 %706 }
 0x3ac   : > { %v710_v25 = vmul.f32 1.442695, %v708_v22  ;;  %472 = vadd.xlane.f32.xlu1 %v471_v23  ;;  %v709_v33 = vsub.f32 %v701_v3, %v707_v32 }
 0x3ae   : > { %1056 = vpow2.f32 %v710_v25  ;;  %v712_v34 = vmul.f32 1.442695, %v709_v33 }
 0x3b0   : > { %v1053_v26 = vpop.eup %1052  ;;  %1058 = vpow2.f32 %v712_v34 }
 0x3b1   : > { %v591_v27 = vsel %vm329_vm3, %v1053_v26, 0.0 }
 0x3b2   : > { %592 = vadd.xlane.f32.xlu0 %v591_v27 }
 0x3b4   : > { %v1055_v28 = vpop.eup %1054 }
 0x3b5   : > { %v594_v29 = vsel %vm329_vm3, %v1055_v28, 0.0 }
 0x3b6   : > { %595 = vadd.xlane.f32.xlu1 %v594_v29 }
 0x3b8   : > { %v1057_v30 = vpop.eup %1056 }
 0x3b9   : > { %v714_v31 = vsel %vm329_vm3, %v1057_v30, 0.0 }
 0x3ba   : > { %715 = vadd.xlane.f32.xlu0 %v714_v31  ;;  %v1059_v35 = vpop.eup %1058 }
 0x3bb   : > { %v717_v36 = vsel %vm329_vm3, %v1059_v35, 0.0 }
 0x3c7   : > { %602 = vrot.lane.b32.xlu1 %v1165_v24, %s1084_s7 }
 0x3d0   : > { %479 = vrot.lane.b32.xlu0 %v1165_v24, %s1082_s28 }
 0x3eb   : > { %718 = vadd.xlane.f32.xlu1 %v717_v36 }
 0x3fc   : > { %725 = vrot.lane.b32.xlu1 %v1165_v24, %s1083_s29 }
 0x437   : > { %v470_v38 = vpop.xlane.xlu0 %469 }
 0x439   : > { %v473_v37 = vpop.xlane.xlu1 %472 }
 0x43a   : > { %1060 = vrcp.f32 %v473_v37 }
 0x43b   : > { %1062 = vrcp.f32 %v470_v38 }
 0x43f   : > { %v593_v39 = vpop.xlane.xlu0 %592 }
 0x443   : > { %v596_v40 = vpop.xlane.xlu1 %595 }
 0x444   : > { %1064 = vrcp.f32 %v596_v40  ;;  %v1061_v42 = vpop.eup %1060 }
 0x445   : > { %1066 = vrcp.f32 %v593_v39  ;;  %v1063_v45 = vpop.eup %1062  ;;  %v477_v46 = vmul.f32 %v1061_v42, %v1051_v21 }
 0x446   : > { %v476_v47 = vmul.f32 %v1063_v45, %v1049_v17 }
 0x447   : > { %v716_v44 = vpop.xlane.xlu0 %715  ;;  %v603_v24 = vpop.permute.xlu1 %602 }
 0x448   : > { %v478_v49 = vpack.c.bf16 %v477_v46, %v476_v47  ;;  %1068 = vrcp.f32 %v716_v44 }
 0x44b   : > { %v480_v48 = vpop.permute.xlu0 %479 }
 0x44c   : > { %977 = vmatpush3.bf16.msra.mxu0 %v480_v48 }
 0x44d   : > { %988 = vmatprep.subr.bf16.mxu0 %v1080_v0 }
 0x44e   : > { %v1065_v50 = vpop.eup %1064 }
 0x44f   : > { %979 = vmatmul.mubr.msk.bf16.vlgmr.msra.gmra.mrb[4].mxu0 %vm329_vm3, %v478_v49  ;;  %v1067_v51 = vpop.eup %1066  ;;  %v600_v52 = vmul.f32 %v1065_v50, %v1055_v28 }
 0x450   : > { %989 = vmatpush3.bf16.msra.mxu0 %v603_v24  ;;  %990 = vmatprep.mubr.msk.bf16.mxu0 %vm1081_vm0, %v1080_v0  ;;  %v599_v53 = vmul.f32 %v1067_v51, %v1053_v26 }
 0x451   : > { %1000 = vmatprep.subr.bf16.mxu0 %v1080_v0 }
 0x452   : > { %v601_v54 = vpack.c.bf16 %v600_v52, %v599_v53  ;;  %v1069_v57 = vpop.eup %1068 }
 0x453   : > { %v722_v59 = vmul.f32 %v1069_v57, %v1057_v30 }
 0x457   : > { %991 = vmatmul.mubr.msk.bf16.vlgmr.msra.gmra.mrb[8].mxu0 %vm329_vm3, %v601_v54 }
 0x458   : > { %1002 = vmatprep.mubr.msk.bf16.mxu0 %vm1081_vm0, %v1080_v0 }
 0x478   : > { %v719_v55 = vpop.xlane.xlu1 %718 }
 0x479   : > { %1070 = vrcp.f32 %v719_v55 }
 0x47c   : > { %v726_v56 = vpop.permute.xlu1 %725 }
 0x47d   : > { %1001 = vmatpush3.bf16.msra.mxu0 %v726_v56 }
 0x483   : > { %v1071_v58 = vpop.eup %1070 }
 0x484   : > { %v723_v60 = vmul.f32 %v1071_v58, %v1059_v35 }
 0x486   : > { %v724_v61 = vpack.c.bf16 %v723_v60, %v722_v59 }
 0x488   : > { %1003 = vmatmul.mubr.msk.bf16.vlgmr.msra.gmra.mrb[12].mxu0 %vm329_vm3, %v724_v61 }
 0x522   : > { %v519_v62 = vpop.f32.mrb[4].mxu0 }
 0x523   : > { %v980_v63 = vpop.f32.mrb[5].mxu0 }
 0x524   : > { %v522_v1 = vpop.f32.mrb[6].mxu0 }
 0x525   : > { %v1022_v2 = vpack.i.bf16 %v522_v1, %v519_v62  ;;  %v981_v3 = vpop.f32.mrb[7].mxu0 }
 0x527   : > { %1023 = vrot.lane.b32.xlu1 %v1022_v2, %s1085_s8 }
 0x52a   : > { %v642_v0 = vpop.f32.mrb[8].mxu0 }
 0x52b   : > { %v992_v6 = vpop.f32.mrb[9].mxu0 }
 0x52c   : > { %v645_v7 = vpop.f32.mrb[10].mxu0 }
 0x52d   : > { %v1027_v8 = vpack.i.bf16 %v645_v7, %v642_v0  ;;  %v993_v9 = vpop.f32.mrb[11].mxu0 }
 0x52f   : > { %1028 = vrot.lane.b32.xlu0 %v1027_v8, %s1086_s9 }
 0x55b   : > { %v765_v10 = vpop.f32.mrb[12].mxu0 }
 0x55c   : > { %v1004_v11 = vpop.f32.mrb[13].mxu0 }
 0x55d   : > { %v768_v12 = vpop.f32.mrb[14].mxu0 }
 0x55e   : > { %v1032_v4 = vpack.i.bf16 %v768_v12, %v765_v10  ;;  %v1005_v13 = vpop.f32.mrb[15].mxu0 }
 0x560   : > { %1033 = vrot.lane.b32.xlu1 %v1032_v4, %s1087_s10 }
 0x599   : > { %v1024_v14 = vpop.permute.xlu1 %1023 }
 0x59a   : > { %v1026_v16 = vunpack.i.h.bf16 %v1024_v14  ;;  %v1025_v5 = vunpack.i.l.bf16 %v1024_v14 }
 0x59c   : > { %v797_v20 = vsel %vm277_vm1, %v1190_v43, %v1026_v16  ;;  %v796_v21 = vsel %vm277_vm1, %v1188_v41, %v1025_v5 }
 0x5a1   : > { %v1029_v15 = vpop.permute.xlu0 %1028 }
 0x5a2   : > { %v1031_v17 = vunpack.i.h.bf16 %v1029_v15  ;;  %v1030_v18 = vunpack.i.l.bf16 %v1029_v15 }
 0x5a4   : > { %v799_v25 = vsel %vm329_vm3, %v797_v20, %v1031_v17  ;;  %v798_v26 = vsel %vm329_vm3, %v796_v21, %v1030_v18 }
 0x5d2   : > { %v1034_v19 = vpop.permute.xlu1 %1033 }
 0x5d3   : > { %v1036_v22 = vunpack.i.h.bf16 %v1034_v19  ;;  %v1035_v23 = vunpack.i.l.bf16 %v1034_v19 }
 0x5d5   : > { %v802_v27 = vsel %vm800_vm5, %v799_v25, %v1036_v22  ;;  %v801_v28 = vsel %vm800_vm5, %v798_v26, %v1035_v23 }
 0x5d6   : > { %v941_v29 = vpack.c.bf16 %v802_v27, %v802_v27  ;;  %v940_v30 = vpack.c.bf16 %v801_v28, %v801_v28 }
 0x5d8   : > { %813 = vst.msk [vmem:[%s257_s13 + $0x4] sm:$0xf] %vm811_vm6, %v941_v29  ;;  %812 = vst.msk [vmem:[%s257_s13] sm:$0xf] %vm811_vm6, %v940_v30 }
 0x5d9 PF: > { %s14_s15 = sadd.s32 1, %s1078_s15  }
 0x5da   : > { %p11_p4 = scmp.ge.s32.totalorder %s14_s15, 4  }
 0x5dc   :  { %13 = sbr.rel (!%p11_p4) target bundleno = 1 (0x1), region = 75 }

// kernel: decoder_forward.30
= control target key start
LH: loop header
LB: loop body
LE: loop exit
PB: predicated region body
PF: predicated region fallthrough
CT: control target
= control target key end

     0   :  { %s335_s1 = inlined_call_operand.vmem [shape: bf16[128,128], index: 1, kind: input, shape index: {}]   ;;  %s336_s0 = inlined_call_operand.vmem [shape: bf16[32,128], index: 0, kind: input, shape index: {}]   ;;  %s337_s2 = inlined_call_operand.vmem [shape: f32[1,128], index: 2, kind: input, shape index: {}]   ;;  %s338_s3 = inlined_call_operand.vmem [shape: bf16[32,128], index: 3, kind: output, shape index: {}]  }
   0x1   :  { %v266_v0 = vld [vmem:[%s335_s1] sm:$0xff]   ;;  %v267_v1 = vld [vmem:[%s335_s1 + $0x8] sm:$0xff]   ;;  %v268_v2 = vld [vmem:[%s335_s1 + $0x10] sm:$0xff]  }
   0x2   :  { %246 = vmatprep.subr.bf16.mxu0 %v266_v0  ;;  %v269_v3 = vld [vmem:[%s335_s1 + $0x18] sm:$0xff]   ;;  %v274_v4 = vld [vmem:[%s336_s0] sm:$0xff]   ;;  %v271_v6 = vld [vmem:[%s335_s1 + $0x28] sm:$0xff]  }
   0x3   :  { %247 = vmatpush3.bf16.msra.mxu0 %v266_v0  ;;  %262 = vmatprep.mubr.bf16.mxu0 %v274_v4  ;;  %v270_v5 = vld [vmem:[%s335_s1 + $0x20] sm:$0xff]   ;;  %v272_v7 = vld [vmem:[%s335_s1 + $0x30] sm:$0xff]   ;;  %v273_v8 = vld [vmem:[%s335_s1 + $0x38] sm:$0xff]  }
   0x4   :  { %248 = vmatprep.subr.bf16.mxu0 %v267_v1  ;;  %v275_v9 = vld [vmem:[%s336_s0 + $0x8] sm:$0xff]   ;;  %v216_v11 = vld [vmem:[%s337_s2] ss:$0 sm:$0xff] }
   0x7   :  { %249 = vmatpush3.bf16.msra.mxu0 %v267_v1 }
   0x8   :  { %250 = vmatprep.subr.bf16.mxu0 %v268_v2 }
   0xb   :  { %251 = vmatpush3.bf16.msra.mxu0 %v268_v2 }
   0xc   :  { %252 = vmatprep.subr.bf16.mxu0 %v269_v3 }
   0xf   :  { %253 = vmatpush3.bf16.msra.mxu0 %v269_v3 }
  0x10   :  { %254 = vmatprep.subr.bf16.mxu0 %v270_v5 }
  0x13   :  { %255 = vmatpush3.bf16.msra.mxu0 %v270_v5 }
  0x14   :  { %256 = vmatprep.subr.bf16.mxu0 %v271_v6 }
  0x17   :  { %257 = vmatpush3.bf16.msra.mxu0 %v271_v6 }
  0x18   :  { %258 = vmatprep.subr.bf16.mxu0 %v272_v7 }
  0x1b   :  { %259 = vmatpush3.bf16.msra.mxu0 %v272_v7 }
  0x1c   :  { %260 = vmatprep.subr.bf16.mxu0 %v273_v8 }
  0x1f   :  { %261 = vmatpush3.bf16.msra.mxu0 %v273_v8 }
  0x22   :  { %263 = vmatmul.mubr.bf16.vlgmr.msra.gmra.mrb[0].mxu0 %v275_v9 }
  0xf5   :  { %v264_v10 = vpop.f32.mrb[0].mxu0 }
  0xf6   :  { %v141_v12 = vpop.f32.mrb[1].mxu0  ;;  %v180_v14 = vadd.f32 %v264_v10, %v216_v11 }
  0xf7   :  { %v265_v13 = vpop.f32.mrb[2].mxu0  ;;  %v178_v17 = vadd.f32 %v216_v11, %v141_v12 }
  0xf8   :  { %v181_v15 = vadd.f32 %v265_v13, %v216_v11  ;;  %v144_v16 = vpop.f32.mrb[3].mxu0 }
  0xf9   :  { %v179_v18 = vadd.f32 %v216_v11, %v144_v16 }
  0xfa   :  { %v233_v19 = vpack.c.bf16 %v181_v15, %v180_v14 }
  0xfb   :  { %v228_v20 = vpack.c.bf16 %v179_v18, %v178_v17 }
  0xfc   :  { %235 = vst [vmem:[%s338_s3 + $0x8] sm:$0xff] %v233_v19  }
  0xfd   :  { %229 = vst [vmem:[%s338_s3] sm:$0xff] %v228_v20  }

// kernel: decoder_forward.31
= control target key start
LH: loop header
LB: loop body
LE: loop exit
PB: predicated region body
PF: predicated region fallthrough
CT: control target
= control target key end

     0   :  { %s1107_s15 = smov 0   ;;  %s1235_s0 = inlined_call_operand.vmem [shape: bf16[2,16,32], index: 0, kind: input, shape index: {}]   ;;  %s1236_s1 = inlined_call_operand.vmem [shape: bf16[2,16,32], index: 1, kind: input, shape index: {}]   ;;  %s1237_s2 = inlined_call_operand.vmem [shape: bf16[2,16,32], index: 2, kind: input, shape index: {}]   ;;  %s1238_s3 = inlined_call_operand.vmem [shape: f32[2,1,1,16], index: 3, kind: input, shape index: {}]   ;;  %s1239_s4 = inlined_call_operand.vmem [shape: bf16[2,16,32], index: 4, kind: output, shape index: {}]  }
   0x1 LB: > { %s900_s16 = sadd.s32 4294967295, %s1071_s15   ;;  %p904_p0 = scmp.ge.s32.totalorder %s1071_s15, 1  ;;  %s1071_s15 = sphi %s1107_s15, %s14_s15  }
   0x2   : > { %p190_p1 = scmp.lt.s32.totalorder %s1071_s15, 3 }
   0x4   : > { %p191_p2 = pnand %p904_p0, %p190_p1 }
   0x5   : > { %p229_p3 = scmp.lt.s32.totalorder (!%p191_p2), %s900_s16, 1  ;;  %v1073_v0 = vmov (!%p191_p2), 0.0   ;;  %vm1074_vm0 = vmmov (!%p191_p2), 0   ;;  %vm270_vm1 = vcmask (!%p191_p2), 64512   ;;  %v320_v4 = vlaneseq (!%p191_p2)  ;;  %s1076_s27 = smov (!%p191_p2), 120  }
   0x6   : > { %194 = sbr.rel (%p191_p2) target bundleno = 1497 (0x5d9), region = 36  ;;  %950 = vmatprep.subr.bf16.mxu0 (!%p191_p2), %v1073_v0  ;;  %952 = vmatprep.mubr.msk.bf16.mxu0 (!%p191_p2), %vm1074_vm0, %v1073_v0  ;;  %v1075_v8 = vmov (!%p191_p2), 0   ;;  %vm327_vm4 = vcmask (!%p191_p2), 130048   ;;  %s1077_s28 = smov (!%p191_p2), 104   ;;  %vm798_vm5 = vcmask (!%p191_p2), 195584   ;;  %vm809_vm6 = vcmask (!%p191_p2), 257024  }
   0x7   : > { %956 = vmatprep.subr.bf16.mxu1 (!%p191_p2), %v1073_v0  ;;  %958 = vmatprep.mubr.msk.bf16.mxu1 (!%p191_p2), %vm1074_vm0, %v1073_v0  ;;  %v321_v6 = vshrl.u32 (!%p191_p2), %v320_v4, 7  ;;  %s1078_s6 = smov (!%p191_p2), 112   ;;  %s1079_s7 = smov (!%p191_p2), 8  }
   0x8   : > { %s1080_s8 = smov (!%p191_p2), 16   ;;  %s1081_s9 = smov (!%p191_p2), 24  }
   0x9   : > { %v322_v7 = vsub.s32 (!%p191_p2), 0, %v321_v6 }
   0xd   : > { %s1241_s16 = smov (!%p229_p3, %s900_s16), 1 }
   0xe   : > { %s1121_s17 = sshll.u32 %s1241_s16, 3  ;;  %s246_s26 = scalar_lea.vmem %s1238_s3, %s1241_s16 }
   0xf   : > { %s238_s20 = scalar_lea.vmem %s1236_s1, %s1121_s17  ;;  %s233_s23 = scalar_lea.vmem %s1235_s0, %s1121_s17  ;;  %v259_v5 = vld [vmem:[%s246_s26] sm:$0x1] }
  0x10   : > { %v1030_v1 = vld [vmem:[%s238_s20] sm:$0xff]   ;;  %vm318_vm2 = vcmp.ne.f32.partialorder %v259_v5, 0.0  ;;  %s243_s5 = scalar_lea.vmem %s1237_s2, %s1121_s17  ;;  %s251_s12 = scalar_lea.vmem %s1239_s4, %s1121_s17 }
  0x11   : > { %v275_v2 = vsel %vm270_vm1, %v1030_v1, 0  ;;  %v1031_v3 = vld [vmem:[%s233_s23] sm:$0xff]   ;;  %v319_v9 = vsel %vm318_vm2, 1, %v1075_v8 }
  0x12   : > { %951 = vmatpush3.bf16.xpose.msra.mxu0 %v275_v2  ;;  %v1139_v10 = vrot.slane %v319_v9, %v322_v7  ;;  %v1156_v29 = vld [vmem:[%s243_s5] sm:$0xff]  }
  0x13   : > { %968 = vmatprep.subr.bf16.mxu0 %v1073_v0  ;;  %957 = vmatpush3.bf16.msra.mxu1 %v1156_v29 }
  0x14   : > { %vm324_vm3 = vcmp.eq.s32.totalorder %v1139_v10, 1  ;;  %962 = vmatprep.subr.bf16.mxu1 %v1073_v0 }
  0x19   : > { %953 = vmatmul.mubr.msk.bf16.vlgmr.msra.gmra.mrb[0].mxu0 %vm270_vm1, %v1031_v3 }
  0x1a   : > { %970 = vmatprep.mubr.msk.bf16.mxu0 %vm1074_vm0, %v1073_v0 }
  0xec   : > { %v311_v11 = vpop.f32.mrb[0].mxu0 }
  0xed   : > { %v325_v12 = vsel %vm324_vm3, %v311_v11, -1e+30  ;;  %v954_v13 = vpop.f32.mrb[1].mxu0 }
  0xee   : > { %v314_v14 = vpop.f32.mrb[2].mxu0  ;;  %v328_v15 = vsel %vm327_vm4, %v325_v12, -inf }
  0xef   : > { %v326_v16 = vsel %vm324_vm3, %v314_v14, -1e+30  ;;  %329 = vmax.xlane.f32.xlu0 %v328_v15  ;;  %v955_v17 = vpop.f32.mrb[3].mxu0 }
  0xf0   : > { %v331_v18 = vsel %vm327_vm4, %v326_v16, -inf }
  0xf3   : > { %332 = vmax.xlane.f32.xlu0 %v331_v18 }
 0x109   : > { %403 = vrot.lane.b32.xlu0 %v1030_v1, %s1076_s27 }
 0x10d   : > { %649 = vrot.lane.b32.xlu0 %v1030_v1, %s1077_s28 }
 0x17c   : > { %v330_v19 = vpop.xlane.xlu0 %329 }
 0x17d   : > { %v334_v20 = vsub.f32 %v325_v12, %v330_v19 }
 0x17f   : > { %v336_v21 = vmul.f32 1.442695, %v334_v20 }
 0x180   : > { %v333_v22 = vpop.xlane.xlu0 %332 }
 0x181   : > { %1033 = vpow2.f32 %v336_v21  ;;  %v335_v23 = vsub.f32 %v326_v16, %v333_v22 }
 0x183   : > { %v338_v24 = vmul.f32 1.442695, %v335_v23 }
 0x184   : > { %v404_v34 = vpop.permute.xlu0 %403 }
 0x185   : > { %1035 = vpow2.f32 %v338_v24  ;;  %v409_v38 = vsel %vm270_vm1, %v404_v34, 0 }
 0x188   : > { %v650_v42 = vpop.permute.xlu0 %649 }
 0x189   : > { %v655_v44 = vsel %vm270_vm1, %v650_v42, 0 }
 0x18b   : > { %v1034_v25 = vpop.eup %1033 }
 0x18c   : > { %v340_v26 = vsel %vm327_vm4, %v1034_v25, 0.0 }
 0x18d   : > { %341 = vadd.xlane.f32.xlu1 %v340_v26 }
 0x18f   : > { %v1036_v27 = vpop.eup %1035 }
 0x190   : > { %v343_v28 = vsel %vm327_vm4, %v1036_v27, 0.0 }
 0x191   : > { %344 = vadd.xlane.f32.xlu1 %v343_v28 }
 0x1a2   : > { %401 = vrot.lane.b32.xlu1 %v1031_v3, %s1076_s27 }
 0x1a6   : > { %526 = vrot.lane.b32.xlu1 %v1030_v1, %s1078_s6 }
 0x1aa   : > { %524 = vrot.lane.b32.xlu1 %v1031_v3, %s1078_s6 }
 0x1ae   : > { %647 = vrot.lane.b32.xlu1 %v1031_v3, %s1077_s28 }
 0x21a   : > { %v342_v30 = vpop.xlane.xlu1 %341 }
 0x21b   : > { %1037 = vrcp.f32 %v342_v30 }
 0x21e   : > { %v345_v31 = vpop.xlane.xlu1 %344 }
 0x21f   : > { %1039 = vrcp.f32 %v345_v31 }
 0x222   : > { %v402_v37 = vpop.permute.xlu1 %401 }
 0x225   : > { %v1038_v32 = vpop.eup %1037 }
 0x226   : > { %v348_v35 = vmul.f32 %v1038_v32, %v1034_v25  ;;  %v527_v40 = vpop.permute.xlu1 %526 }
 0x227   : > { %v532_v41 = vsel %vm270_vm1, %v527_v40, 0 }
 0x229   : > { %v1040_v33 = vpop.eup %1039 }
 0x22a   : > { %v349_v36 = vmul.f32 %v1040_v33, %v1036_v27  ;;  %v525_v43 = vpop.permute.xlu1 %524 }
 0x22c   : > { %v350_v39 = vpack.c.bf16 %v349_v36, %v348_v35 }
 0x22e   : > { %959 = vmatmul.mubr.msk.bf16.vlgmr.msra.gmra.mrb[0].mxu1 %vm327_vm4, %v350_v39  ;;  %v648_v45 = vpop.permute.xlu1 %647 }
 0x22f   : > { %963 = vmatpush3.bf16.xpose.msra.mxu1 %v409_v38  ;;  %964 = vmatprep.mubr.msk.bf16.mxu1 %vm1074_vm0, %v1073_v0 }
 0x230   : > { %974 = vmatprep.subr.bf16.mxu1 %v1073_v0 }
 0x236   : > { %965 = vmatmul.mubr.msk.bf16.vlgmr.msra.gmra.mrb[4].mxu1 %vm270_vm1, %v402_v37 }
 0x237   : > { %975 = vmatpush3.bf16.xpose.msra.mxu1 %v532_v41  ;;  %976 = vmatprep.mubr.msk.bf16.mxu1 %vm1074_vm0, %v1073_v0 }
 0x238   : > { %986 = vmatprep.subr.bf16.mxu1 %v1073_v0 }
 0x23e   : > { %977 = vmatmul.mubr.msk.bf16.vlgmr.msra.gmra.mrb[8].mxu1 %vm270_vm1, %v525_v43 }
 0x23f   : > { %987 = vmatpush3.bf16.xpose.msra.mxu1 %v655_v44  ;;  %988 = vmatprep.mubr.msk.bf16.mxu1 %vm1074_vm0, %v1073_v0 }
 0x246   : > { %989 = vmatmul.mubr.msk.bf16.vlgmr.msra.gmra.mrb[12].mxu1 %vm270_vm1, %v648_v45 }
 0x301   : > { %v1179_v46 = vpop.f32.mrb[0].mxu1 }
 0x302   : > { %v960_v47 = vpop.f32.mrb[1].mxu1 }
 0x303   : > { %v1181_v48 = vpop.f32.mrb[2].mxu1 }
 0x304   : > { %v961_v49 = vpop.f32.mrb[3].mxu1 }
 0x309   : > { %v445_v50 = vpop.f32.mrb[4].mxu1 }
 0x30a   : > { %v452_v51 = vsel %vm324_vm3, %v445_v50, -1e+30  ;;  %v966_v52 = vpop.f32.mrb[5].mxu1 }
 0x30b   : > { %v448_v53 = vpop.f32.mrb[6].mxu1  ;;  %v454_v54 = vsel %vm327_vm4, %v452_v51, -inf }
 0x30c   : > { %v453_v55 = vsel %vm324_vm3, %v448_v53, -1e+30  ;;  %455 = vmax.xlane.f32.xlu0 %v454_v54  ;;  %v967_v56 = vpop.f32.mrb[7].mxu1 }
 0x30d   : > { %v457_v57 = vsel %vm327_vm4, %v453_v55, -inf }
 0x30e   : > { %458 = vmax.xlane.f32.xlu1 %v457_v57 }
 0x311   : > { %v568_v58 = vpop.f32.mrb[8].mxu1 }
 0x312   : > { %v575_v59 = vsel %vm324_vm3, %v568_v58, -1e+30  ;;  %v978_v60 = vpop.f32.mrb[9].mxu1 }
 0x313   : > { %v571_v61 = vpop.f32.mrb[10].mxu1  ;;  %v577_v62 = vsel %vm327_vm4, %v575_v59, -inf }
 0x314   : > { %v576_v63 = vsel %vm324_vm3, %v571_v61, -1e+30  ;;  %578 = vmax.xlane.f32.xlu0 %v577_v62  ;;  %v979_v1 = vpop.f32.mrb[11].mxu1 }
 0x315   : > { %v580_v2 = vsel %vm327_vm4, %v576_v63, -inf }
 0x318   : > { %581 = vmax.xlane.f32.xlu0 %v580_v2 }
 0x319   : > { %v691_v3 = vpop.f32.mrb[12].mxu1 }
 0x31a   : > { %v698_v4 = vsel %vm324_vm3, %v691_v3, -1e+30  ;;  %v990_v5 = vpop.f32.mrb[13].mxu1 }
 0x31b   : > { %v694_v6 = vpop.f32.mrb[14].mxu1  ;;  %v700_v7 = vsel %vm327_vm4, %v698_v4, -inf }
 0x31c   : > { %v699_v8 = vsel %vm324_vm3, %v694_v6, -1e+30  ;;  %701 = vmax.xlane.f32.xlu0 %v700_v7  ;;  %v991_v9 = vpop.f32.mrb[15].mxu1 }
 0x31d   : > { %v703_v11 = vsel %vm327_vm4, %v699_v8, -inf }
 0x31e   : > { %704 = vmax.xlane.f32.xlu1 %v703_v11 }
 0x399   : > { %v456_v12 = vpop.xlane.xlu0 %455 }
 0x39a   : > { %v460_v13 = vsub.f32 %v452_v51, %v456_v12 }
 0x39b   : > { %v459_v14 = vpop.xlane.xlu1 %458 }
 0x39c   : > { %v462_v15 = vmul.f32 1.442695, %v460_v13  ;;  %v461_v16 = vsub.f32 %v453_v55, %v459_v14 }
 0x39e   : > { %1041 = vpow2.f32 %v462_v15  ;;  %v464_v17 = vmul.f32 1.442695, %v461_v16 }
 0x3a0   : > { %1043 = vpow2.f32 %v464_v17 }
 0x3a1   : > { %v579_v18 = vpop.xlane.xlu0 %578 }
 0x3a2   : > { %v583_v19 = vsub.f32 %v575_v59, %v579_v18 }
 0x3a4   : > { %v585_v20 = vmul.f32 1.442695, %v583_v19 }
 0x3a5   : > { %v582_v21 = vpop.xlane.xlu0 %581 }
 0x3a6   : > { %1045 = vpow2.f32 %v585_v20  ;;  %v584_v10 = vsub.f32 %v576_v63, %v582_v21 }
 0x3a8   : > { %v1042_v22 = vpop.eup %1041  ;;  %v587_v23 = vmul.f32 1.442695, %v584_v10 }
 0x3a9   : > { %v702_v24 = vpop.xlane.xlu0 %701  ;;  %v466_v25 = vsel %vm327_vm4, %v1042_v22, 0.0 }
 0x3aa   : > { %v1044_v26 = vpop.eup %1043  ;;  %1047 = vpow2.f32 %v587_v23  ;;  %v706_v27 = vsub.f32 %v698_v4, %v702_v24  ;;  %467 = vadd.xlane.f32.xlu0 %v466_v25 }
 0x3ab   : > { %v469_v28 = vsel %vm327_vm4, %v1044_v26, 0.0  ;;  %v705_v37 = vpop.xlane.xlu1 %704 }
 0x3ac   : > { %v708_v30 = vmul.f32 1.442695, %v706_v27  ;;  %470 = vadd.xlane.f32.xlu1 %v469_v28  ;;  %v707_v38 = vsub.f32 %v699_v8, %v705_v37 }
 0x3ae   : > { %1049 = vpow2.f32 %v708_v30  ;;  %v710_v39 = vmul.f32 1.442695, %v707_v38 }
 0x3b0   : > { %v1046_v31 = vpop.eup %1045  ;;  %1051 = vpow2.f32 %v710_v39 }
 0x3b1   : > { %v589_v32 = vsel %vm327_vm4, %v1046_v31, 0.0 }
 0x3b2   : > { %590 = vadd.xlane.f32.xlu0 %v589_v32 }
 0x3b4   : > { %v1048_v33 = vpop.eup %1047 }
 0x3b5   : > { %v592_v34 = vsel %vm327_vm4, %v1048_v33, 0.0 }
 0x3b6   : > { %593 = vadd.xlane.f32.xlu1 %v592_v34 }
 0x3b8   : > { %v1050_v35 = vpop.eup %1049 }
 0x3b9   : > { %v712_v36 = vsel %vm327_vm4, %v1050_v35, 0.0 }
 0x3ba   : > { %713 = vadd.xlane.f32.xlu0 %v712_v36  ;;  %v1052_v40 = vpop.eup %1051 }
 0x3bb   : > { %v715_v41 = vsel %vm327_vm4, %v1052_v40, 0.0 }
 0x3c7   : > { %600 = vrot.lane.b32.xlu1 %v1156_v29, %s1078_s6 }
 0x3d0   : > { %477 = vrot.lane.b32.xlu0 %v1156_v29, %s1076_s27 }
 0x3eb   : > { %716 = vadd.xlane.f32.xlu1 %v715_v41 }
 0x3fc   : > { %723 = vrot.lane.b32.xlu1 %v1156_v29, %s1077_s28 }
 0x437   : > { %v468_v43 = vpop.xlane.xlu0 %467 }
 0x439   : > { %v471_v42 = vpop.xlane.xlu1 %470 }
 0x43a   : > { %1053 = vrcp.f32 %v471_v42 }
 0x43b   : > { %1055 = vrcp.f32 %v468_v43 }
 0x43f   : > { %v591_v44 = vpop.xlane.xlu0 %590 }
 0x443   : > { %v594_v45 = vpop.xlane.xlu1 %593 }
 0x444   : > { %1057 = vrcp.f32 %v594_v45  ;;  %v1054_v47 = vpop.eup %1053 }
 0x445   : > { %1059 = vrcp.f32 %v591_v44  ;;  %v1056_v50 = vpop.eup %1055  ;;  %v475_v51 = vmul.f32 %v1054_v47, %v1044_v26 }
 0x446   : > { %v474_v52 = vmul.f32 %v1056_v50, %v1042_v22 }
 0x447   : > { %v714_v49 = vpop.xlane.xlu0 %713  ;;  %v601_v29 = vpop.permute.xlu1 %600 }
 0x448   : > { %v476_v54 = vpack.c.bf16 %v475_v51, %v474_v52  ;;  %1061 = vrcp.f32 %v714_v49 }
 0x44b   : > { %v478_v53 = vpop.permute.xlu0 %477 }
 0x44c   : > { %969 = vmatpush3.bf16.msra.mxu0 %v478_v53 }
 0x44d   : > { %980 = vmatprep.subr.bf16.mxu0 %v1073_v0 }
 0x44e   : > { %v1058_v55 = vpop.eup %1057 }
 0x44f   : > { %971 = vmatmul.mubr.msk.bf16.vlgmr.msra.gmra.mrb[4].mxu0 %vm327_vm4, %v476_v54  ;;  %v1060_v56 = vpop.eup %1059  ;;  %v598_v57 = vmul.f32 %v1058_v55, %v1048_v33 }
 0x450   : > { %981 = vmatpush3.bf16.msra.mxu0 %v601_v29  ;;  %982 = vmatprep.mubr.msk.bf16.mxu0 %vm1074_vm0, %v1073_v0  ;;  %v597_v58 = vmul.f32 %v1060_v56, %v1046_v31 }
 0x451   : > { %992 = vmatprep.subr.bf16.mxu0 %v1073_v0 }
 0x452   : > { %v599_v59 = vpack.c.bf16 %v598_v57, %v597_v58  ;;  %v1062_v62 = vpop.eup %1061 }
 0x453   : > { %v720_v1 = vmul.f32 %v1062_v62, %v1050_v35 }
 0x457   : > { %983 = vmatmul.mubr.msk.bf16.vlgmr.msra.gmra.mrb[8].mxu0 %vm327_vm4, %v599_v59 }
 0x458   : > { %994 = vmatprep.mubr.msk.bf16.mxu0 %vm1074_vm0, %v1073_v0 }
 0x478   : > { %v717_v60 = vpop.xlane.xlu1 %716 }
 0x479   : > { %1063 = vrcp.f32 %v717_v60 }
 0x47c   : > { %v724_v61 = vpop.permute.xlu1 %723 }
 0x47d   : > { %993 = vmatpush3.bf16.msra.mxu0 %v724_v61 }
 0x483   : > { %v1064_v63 = vpop.eup %1063 }
 0x484   : > { %v721_v2 = vmul.f32 %v1064_v63, %v1052_v40 }
 0x486   : > { %v722_v3 = vpack.c.bf16 %v721_v2, %v720_v1 }
 0x488   : > { %995 = vmatmul.mubr.msk.bf16.vlgmr.msra.gmra.mrb[12].mxu0 %vm327_vm4, %v722_v3 }
 0x522   : > { %v517_v4 = vpop.f32.mrb[4].mxu0 }
 0x523   : > { %v972_v5 = vpop.f32.mrb[5].mxu0 }
 0x524   : > { %v520_v6 = vpop.f32.mrb[6].mxu0 }
 0x525   : > { %v1015_v7 = vpack.i.bf16 %v520_v6, %v517_v4  ;;  %v973_v8 = vpop.f32.mrb[7].mxu0 }
 0x527   : > { %1016 = vrot.lane.b32.xlu1 %v1015_v7, %s1079_s7 }
 0x52a   : > { %v640_v0 = vpop.f32.mrb[8].mxu0 }
 0x52b   : > { %v984_v9 = vpop.f32.mrb[9].mxu0 }
 0x52c   : > { %v643_v11 = vpop.f32.mrb[10].mxu0 }
 0x52d   : > { %v1020_v12 = vpack.i.bf16 %v643_v11, %v640_v0  ;;  %v985_v13 = vpop.f32.mrb[11].mxu0 }
 0x52f   : > { %1021 = vrot.lane.b32.xlu0 %v1020_v12, %s1080_s8 }
 0x55b   : > { %v763_v14 = vpop.f32.mrb[12].mxu0 }
 0x55c   : > { %v996_v15 = vpop.f32.mrb[13].mxu0 }
 0x55d   : > { %v766_v16 = vpop.f32.mrb[14].mxu0 }
 0x55e   : > { %v1025_v17 = vpack.i.bf16 %v766_v16, %v763_v14  ;;  %v997_v18 = vpop.f32.mrb[15].mxu0 }
 0x560   : > { %1026 = vrot.lane.b32.xlu1 %v1025_v17, %s1081_s9 }
 0x599   : > { %v1017_v19 = vpop.permute.xlu1 %1016 }
 0x59a   : > { %v1019_v21 = vunpack.i.h.bf16 %v1017_v19  ;;  %v1018_v10 = vunpack.i.l.bf16 %v1017_v19 }
 0x59c   : > { %v795_v25 = vsel %vm270_vm1, %v1181_v48, %v1019_v21  ;;  %v794_v26 = vsel %vm270_vm1, %v1179_v46, %v1018_v10 }
 0x5a1   : > { %v1022_v20 = vpop.permute.xlu0 %1021 }
 0x5a2   : > { %v1024_v22 = vunpack.i.h.bf16 %v1022_v20  ;;  %v1023_v23 = vunpack.i.l.bf16 %v1022_v20 }
 0x5a4   : > { %v797_v30 = vsel %vm327_vm4, %v795_v25, %v1024_v22  ;;  %v796_v31 = vsel %vm327_vm4, %v794_v26, %v1023_v23 }
 0x5d2   : > { %v1027_v24 = vpop.permute.xlu1 %1026 }
 0x5d3   : > { %v1029_v27 = vunpack.i.h.bf16 %v1027_v24  ;;  %v1028_v28 = vunpack.i.l.bf16 %v1027_v24 }
 0x5d5   : > { %v800_v32 = vsel %vm798_vm5, %v797_v30, %v1029_v27  ;;  %v799_v33 = vsel %vm798_vm5, %v796_v31, %v1028_v28 }
 0x5d6   : > { %v933_v34 = vpack.c.bf16 %v800_v32, %v800_v32  ;;  %v932_v35 = vpack.c.bf16 %v799_v33, %v799_v33 }
 0x5d8   : > { %811 = vst.msk [vmem:[%s251_s12 + $0x4] sm:$0xf] %vm809_vm6, %v933_v34  ;;  %810 = vst.msk [vmem:[%s251_s12] sm:$0xf] %vm809_vm6, %v932_v35 }
 0x5d9 PF: > { %s14_s15 = sadd.s32 1, %s1071_s15  }
 0x5da   : > { %p11_p4 = scmp.ge.s32.totalorder %s14_s15, 4  }
 0x5dc   :  { %13 = sbr.rel (!%p11_p4) target bundleno = 1 (0x1), region = 75 }

// kernel: decoder_forward.49
= control target key start
LH: loop header
LB: loop body
LE: loop exit
PB: predicated region body
PF: predicated region fallthrough
CT: control target
= control target key end

     0   :  { %v210_v0 = vmov 0.0   ;;  %vm211_vm0 = vmmov 0   ;;  %s268_s1 = inlined_call_operand.vmem [shape: bf16[128,128], index: 1, kind: input, shape index: {}]   ;;  %s269_s0 = inlined_call_operand.vmem [shape: bf16[16,128], index: 0, kind: input, shape index: {}]   ;;  %s270_s2 = inlined_call_operand.vmem [shape: f32[1,128], index: 2, kind: input, shape index: {}]   ;;  %s271_s3 = inlined_call_operand.vmem [shape: f32[16,128], index: 3, kind: output, shape index: {}]  }
   0x1   :  { %179 = vmatprep.subr.bf16.mxu0 %v210_v0  ;;  %v201_v1 = vld [vmem:[%s268_s1] sm:$0xff]   ;;  %195 = vmatprep.mubr.msk.bf16.mxu0 %vm211_vm0, %v210_v0  ;;  %v202_v2 = vld [vmem:[%s268_s1 + $0x8] sm:$0xff]   ;;  %v203_v3 = vld [vmem:[%s268_s1 + $0x10] sm:$0xff]  }
   0x2   :  { %180 = vmatpush3.bf16.msra.mxu0 %v201_v1  ;;  %v204_v4 = vld [vmem:[%s268_s1 + $0x18] sm:$0xff]   ;;  %v205_v5 = vld [vmem:[%s268_s1 + $0x20] sm:$0xff]   ;;  %v206_v6 = vld [vmem:[%s268_s1 + $0x28] sm:$0xff]  }
   0x3   :  { %181 = vmatprep.subr.bf16.mxu0 %v210_v0  ;;  %v207_v7 = vld [vmem:[%s268_s1 + $0x30] sm:$0xff]   ;;  %v208_v8 = vld [vmem:[%s268_s1 + $0x38] sm:$0xff]   ;;  %v209_v9 = vld [vmem:[%s269_s0] sm:$0xff]  }
   0x4   :  { %v169_v10 = vld [vmem:[%s270_s2] ss:$0 sm:$0xff] }
   0x6   :  { %182 = vmatpush3.bf16.msra.mxu0 %v202_v2 }
   0x7   :  { %183 = vmatprep.subr.bf16.mxu0 %v210_v0 }
   0xa   :  { %184 = vmatpush3.bf16.msra.mxu0 %v203_v3 }
   0xb   :  { %185 = vmatprep.subr.bf16.mxu0 %v210_v0 }
   0xe   :  { %186 = vmatpush3.bf16.msra.mxu0 %v204_v4 }
   0xf   :  { %187 = vmatprep.subr.bf16.mxu0 %v210_v0 }
  0x12   :  { %188 = vmatpush3.bf16.msra.mxu0 %v205_v5 }
  0x13   :  { %189 = vmatprep.subr.bf16.mxu0 %v210_v0 }
  0x16   :  { %190 = vmatpush3.bf16.msra.mxu0 %v206_v6 }
  0x17   :  { %191 = vmatprep.subr.bf16.mxu0 %v210_v0 }
  0x1a   :  { %192 = vmatpush3.bf16.msra.mxu0 %v207_v7 }
  0x1b   :  { %193 = vmatprep.subr.bf16.mxu0 %v210_v0 }
  0x1e   :  { %194 = vmatpush3.bf16.msra.mxu0 %v208_v8 }
  0x21   :  { %196 = vmatmul.mubr.bf16.vlgmr.msra.gmra.mrb[0].mxu0 %v209_v9 }
  0xf4   :  { %v129_v11 = vpop.f32.mrb[0].mxu0 }
  0xf5   :  { %v152_v12 = vadd.f32 %v169_v10, %v129_v11  ;;  %v197_v13 = vpop.f32.mrb[1].mxu0 }
  0xf6   :  { %v132_v14 = vpop.f32.mrb[2].mxu0 }
  0xf7   :  { %154 = vst [vmem:[%s271_s3] sm:$0xff] %v152_v12  ;;  %v153_v15 = vadd.f32 %v169_v10, %v132_v14  ;;  %v198_v16 = vpop.f32.mrb[3].mxu0 }
  0xf9   :  { %155 = vst [vmem:[%s271_s3 + $0x8] sm:$0xff] %v153_v15 }

// kernel: decoder_forward.34
= control target key start
LH: loop header
LB: loop body
LE: loop exit
PB: predicated region body
PF: predicated region fallthrough
CT: control target
= control target key end

     0   :  { %v229_v0 = vmov 0.0   ;;  %vm230_vm0 = vmmov 0   ;;  %s284_s1 = inlined_call_operand.vmem [shape: bf16[128,128], index: 1, kind: input, shape index: {}]   ;;  %s285_s0 = inlined_call_operand.vmem [shape: bf16[16,128], index: 0, kind: input, shape index: {}]   ;;  %s286_s2 = inlined_call_operand.vmem [shape: f32[1,128], index: 2, kind: input, shape index: {}]   ;;  %s287_s3 = inlined_call_operand.vmem [shape: bf16[16,128], index: 3, kind: output, shape index: {}]  }
   0x1   :  { %198 = vmatprep.subr.bf16.mxu0 %v229_v0  ;;  %v220_v1 = vld [vmem:[%s284_s1] sm:$0xff]   ;;  %214 = vmatprep.mubr.msk.bf16.mxu0 %vm230_vm0, %v229_v0  ;;  %v221_v2 = vld [vmem:[%s284_s1 + $0x8] sm:$0xff]   ;;  %v222_v3 = vld [vmem:[%s284_s1 + $0x10] sm:$0xff]  }
   0x2   :  { %199 = vmatpush3.bf16.msra.mxu0 %v220_v1  ;;  %v223_v4 = vld [vmem:[%s284_s1 + $0x18] sm:$0xff]   ;;  %v224_v5 = vld [vmem:[%s284_s1 + $0x20] sm:$0xff]   ;;  %v225_v6 = vld [vmem:[%s284_s1 + $0x28] sm:$0xff]  }
   0x3   :  { %200 = vmatprep.subr.bf16.mxu0 %v229_v0  ;;  %v226_v7 = vld [vmem:[%s284_s1 + $0x30] sm:$0xff]   ;;  %v227_v8 = vld [vmem:[%s284_s1 + $0x38] sm:$0xff]   ;;  %v228_v9 = vld [vmem:[%s285_s0] sm:$0xff]  }
   0x4   :  { %v179_v10 = vld [vmem:[%s286_s2] ss:$0 sm:$0xff] }
   0x6   :  { %201 = vmatpush3.bf16.msra.mxu0 %v221_v2 }
   0x7   :  { %202 = vmatprep.subr.bf16.mxu0 %v229_v0 }
   0xa   :  { %203 = vmatpush3.bf16.msra.mxu0 %v222_v3 }
   0xb   :  { %204 = vmatprep.subr.bf16.mxu0 %v229_v0 }
   0xe   :  { %205 = vmatpush3.bf16.msra.mxu0 %v223_v4 }
   0xf   :  { %206 = vmatprep.subr.bf16.mxu0 %v229_v0 }
  0x12   :  { %207 = vmatpush3.bf16.msra.mxu0 %v224_v5 }
  0x13   :  { %208 = vmatprep.subr.bf16.mxu0 %v229_v0 }
  0x16   :  { %209 = vmatpush3.bf16.msra.mxu0 %v225_v6 }
  0x17   :  { %210 = vmatprep.subr.bf16.mxu0 %v229_v0 }
  0x1a   :  { %211 = vmatpush3.bf16.msra.mxu0 %v226_v7 }
  0x1b   :  { %212 = vmatprep.subr.bf16.mxu0 %v229_v0 }
  0x1e   :  { %213 = vmatpush3.bf16.msra.mxu0 %v227_v8 }
  0x21   :  { %215 = vmatmul.mubr.bf16.vlgmr.msra.gmra.mrb[0].mxu0 %v228_v9 }
  0xf4   :  { %v129_v11 = vpop.f32.mrb[0].mxu0 }
  0xf5   :  { %v152_v12 = vadd.f32 %v179_v10, %v129_v11  ;;  %v216_v13 = vpop.f32.mrb[1].mxu0 }
  0xf6   :  { %v132_v14 = vpop.f32.mrb[2].mxu0 }
  0xf7   :  { %v153_v15 = vadd.f32 %v179_v10, %v132_v14  ;;  %v217_v16 = vpop.f32.mrb[3].mxu0  ;;  %v154_v17 = vmax.f32 %v152_v12, 0.0 }
  0xf9   :  { %v155_v18 = vmax.f32 %v153_v15, 0.0 }
  0xfb   :  { %v187_v19 = vpack.c.bf16 %v155_v18, %v154_v17 }
  0xfd   :  { %188 = vst [vmem:[%s287_s3] sm:$0xff] %v187_v19  }

</bundles_post_ra>
